<compile_context>
chip_gen: v5e
topology: v5e:2x2
jax: 0.10.0
libtpu: 0.0.40
codegen_flags: <defaults>
</compile_context>

<pallas_src>
import numpy as np
import jax
import jax.numpy as jnp
from jax import lax
from jax.experimental import pallas as pl
from jax.experimental.pallas import tpu as pltpu

KH = KW = 3   # conv kernel size
POOL = 2      # maxpool window / stride


def _round_up(v, m):
    return (v + m - 1) // m * m


# --------------------------------------------------------------------------- #
# Kernel
# --------------------------------------------------------------------------- #
def _conv_relu_pool_kernel(a_ref, w_ref, o_ref):
    """One row-tile of fused conv3x3 + bias + ReLU + maxpool(2).

    a_ref: (POOL, TMo, kpad)      bf16  im2row LHS, pool-phase-major height
    w_ref: (kpad, POOL*Wo*Cout)   bf16  banded conv weights (+ bias row)
    o_ref: (TMo, Wo*Cout)         f32   pooled output rows (lane-dense)
    """
    w = w_ref[...]
    # One GEMM per height pool phase against the same banded RHS.
    y0 = jnp.dot(a_ref[0], w, preferred_element_type=jnp.float32)
    y1 = jnp.dot(a_ref[1], w, preferred_element_type=jnp.float32)
    ph = jnp.maximum(y0, y1)                        # maxpool over height (VPU)
    half = ph.shape[1] // POOL                      # = Wo*Cout
    pw = jnp.maximum(ph[:, :half], ph[:, half:])    # maxpool over width: aligned lane halves
    o_ref[...] = jnp.maximum(pw, 0.0).astype(o_ref.dtype)   # ReLU after pooling


# --------------------------------------------------------------------------- #
# Weight packing (depends only on (w, b, W); call once, reuse across forwards)
# --------------------------------------------------------------------------- #
def pack_weights(w_oihw, b, W):
    """Banded RHS: (kpad, POOL*Wo*Cout) bf16, bias folded in as the last K row.

    Column order is (pool_phase, w_out, c_out) so the width pool in the kernel
    is a max of two aligned lane halves.
    """
    Cout, Cin, kh, kw = w_oihw.shape
    assert (kh, kw) == (KH, KW)
    assert W % POOL == 0
    Wo = W // POOL
    k_used = KH * (W + 2) * Cin + 1            # conv taps + 1 bias column
    kpad = _round_up(k_used, 128)

    # Selection tensor: padded input col (W+2) x (kx, pool_phase, w_out).
    sel = np.zeros((W + 2, KW, POOL, Wo), np.float32)
    for kx in range(KW):
        for p in range(POOL):
            for wp in range(Wo):
                sel[POOL * wp + p + kx, kx, p, wp] = 1.0

    wt_hwio = jnp.transpose(w_oihw, (2, 3, 1, 0))                      # (KH,KW,Cin,Cout)
    w2 = jnp.einsum('xkpw,ykic->yxipwc', jnp.asarray(sel), wt_hwio)    # (KH,W+2,Cin,POOL,Wo,Cout)
    w2 = w2.reshape(KH * (W + 2) * Cin, POOL * Wo * Cout)
    w2 = jnp.concatenate([w2, jnp.tile(b, POOL * Wo)[None, :]], axis=0)  # bias row
    w2 = jnp.pad(w2, ((0, kpad - k_used), (0, 0))).astype(jnp.bfloat16)
    return w2


# --------------------------------------------------------------------------- #
# Forward
# --------------------------------------------------------------------------- #
@jax.jit
def forward(x_nchw, w2):
    """x: (N, 3, H, W), w2: packed weights -> (N, 64, H//2, W//2) (NCHW)."""
    N, Cin, H, W = x_nchw.shape
    assert H % POOL == 0 and W % POOL == 0, "even spatial dims assumed (MaxPool2d(2))"
    Ho, Wo = H // POOL, W // POOL
    kpad, ncols = w2.shape
    Cout = ncols // (POOL * Wo)
    half = Wo * Cout
    k_used = KH * (W + 2) * Cin + 1
    assert k_used <= kpad

    # Row tiling: fold batch*Ho into the matmul M dimension.
    Mrows = N * Ho
    TMo = min(128, _round_up(Mrows, 8))
    Mpad = _round_up(Mrows, TMo)
    grid = (Mpad // TMo,)

    # ---- im2row LHS, pool-phase-major over height ---------------------------
    # a[p, n*Ho + ho, :] = flattened (dy, x, ci) padded row window for conv
    # output row h = 2*ho + p of image n, plus a trailing "1" bias column.
    x = jnp.transpose(x_nchw, (0, 2, 3, 1))                               # NHWC
    xpad = jnp.pad(x, ((0, 0), (1, 1), (1, 1), (0, 0)))                   # conv pad=1
    rows = jnp.stack([xpad[:, dy:dy + H] for dy in range(KH)], axis=2)    # (N,H,KH,W+2,Cin)
    a = rows.reshape(N, Ho, POOL, KH * (W + 2) * Cin)
    a = jnp.transpose(a, (2, 0, 1, 3)).reshape(POOL, Mrows, KH * (W + 2) * Cin)
    a = jnp.concatenate([a, jnp.ones((POOL, Mrows, 1), a.dtype)], axis=-1)
    a = jnp.pad(a, ((0, 0), (0, Mpad - Mrows), (0, kpad - k_used)))
    a = a.astype(jnp.bfloat16)

    out2d = pl.pallas_call(
        _conv_relu_pool_kernel,
        out_shape=jax.ShapeDtypeStruct((Mpad, half), jnp.float32),
        grid_spec=pltpu.PrefetchScalarGridSpec(
            num_scalar_prefetch=0,
            grid=grid,                                         # row tiles of N*Ho
            in_specs=[
                pl.BlockSpec((POOL, TMo, kpad), lambda g: (0, g, 0)),
                pl.BlockSpec((kpad, POOL * half), lambda g: (0, 0)),   # grid-invariant RHS
            ],
            out_specs=pl.BlockSpec((TMo, half), lambda g: (g, 0)),
        ),
        compiler_params=pltpu.CompilerParams(
            dimension_semantics=("parallel",)),
    )(a, w2)

    out = out2d[:Mrows].reshape(N, Ho, Wo, Cout)               # pure reshape
    return jnp.transpose(out, (0, 3, 1, 2)).astype(x_nchw.dtype)   # NCHW (PyTorch parity)


def mock_network_forward(x_nchw, w_oihw, b):
    """Convenience wrapper matching the PyTorch module signature."""
    return forward(x_nchw, pack_weights(w_oihw, b, x_nchw.shape[-1]))


# --------------------------------------------------------------------------- #
# Reference
# --------------------------------------------------------------------------- #
def reference(x_nchw, w_oihw, b):
    y = lax.conv_general_dilated(
        x_nchw, w_oihw, window_strides=(1, 1), padding=((1, 1), (1, 1)),
        dimension_numbers=("NCHW", "OIHW", "NCHW"))
    y = y + b[None, :, None, None]
    y = jnp.maximum(y, 0.0)
    y = lax.reduce_window(y, -jnp.inf, lax.max,
                          (1, 1, POOL, POOL), (1, 1, POOL, POOL), "VALID")
    return y


if __name__ == "__main__":
    key = jax.random.PRNGKey(0)
    k1, k2, k3 = jax.random.split(key, 3)

    N, Cin, H, W, Cout = 2, 3, 16, 16, 64
    x = jax.random.normal(k1, (N, Cin, H, W), jnp.float32)
    w = jax.random.normal(k2, (Cout, Cin, KH, KW), jnp.float32) * 0.1
    b = jax.random.normal(k3, (Cout,), jnp.float32) * 0.1

    # Weight packing hoisted out of the per-forward path (depends only on w, b).
    w2 = jax.block_until_ready(pack_weights(w, b, W))
    y = jax.block_until_ready(forward(x, w2))

    y_ref = reference(x, w, b)
    assert y.shape == (N, Cout, H // POOL, W // POOL), y.shape
    # bf16 MXU operands with f32 accumulation -> relaxed (bf16-level) tolerance.
    max_err = float(jnp.max(jnp.abs(y - y_ref)))
    assert jnp.allclose(y, y_ref, atol=5e-2, rtol=5e-2), max_err
    print("KERNEL_OK")
</pallas_src>

<mosaic_0001>
module attributes {stable_mosaic.version = 11 : i64} {
  func.func @_conv_relu_pool_kernel(%arg0: i32, %arg1: memref<2x16x256xbf16, #tpu.memory_space<vmem>>, %arg2: memref<256x1024xbf16, #tpu.memory_space<vmem>>, %arg3: memref<16x512xf32, #tpu.memory_space<vmem>>) attributes {dimension_semantics = [#tpu.dimension_semantics<parallel>], iteration_bounds = array<i64: 1>, scalar_prefetch = 0 : i64, scratch_operands = 0 : i64, tpu.core_type = #tpu.core_type<tc>, window_params = [{transform_indices = @transform_0, window_bounds = array<i64: 2, 16, 256>}, {pipeline_mode = #tpu.pipeline_mode<synchronous>, transform_indices = @transform_1, window_bounds = array<i64: 256, 1024>}, {transform_indices = @transform_2, window_bounds = array<i64: 16, 512>}]} {
    %c0 = arith.constant 0 : index
    %c0_0 = arith.constant 0 : index
    %0 = vector.load %arg2[%c0, %c0_0] : memref<256x1024xbf16, #tpu.memory_space<vmem>>, vector<256x1024xbf16>
    %c0_1 = arith.constant 0 : index
    %c0_2 = arith.constant 0 : index
    %c0_3 = arith.constant 0 : index
    %1 = vector.load %arg1[%c0_1, %c0_2, %c0_3] : memref<2x16x256xbf16, #tpu.memory_space<vmem>>, vector<1x16x256xbf16>
    %2 = vector.shape_cast %1 : vector<1x16x256xbf16> to vector<16x256xbf16>
    %cst = arith.constant dense<0.000000e+00> : vector<16x1024xf32>
    %3 = tpu.matmul %2, %0, %cst {dimension_numbers = #tpu.dot_dimension_numbers<[1], [0], [0], [1], [0, 0, 1, 1], [], []>} : vector<16x256xbf16>, vector<256x1024xbf16>, vector<16x1024xf32> -> vector<16x1024xf32>
    %c1 = arith.constant 1 : index
    %c0_4 = arith.constant 0 : index
    %c0_5 = arith.constant 0 : index
    %4 = vector.load %arg1[%c1, %c0_4, %c0_5] : memref<2x16x256xbf16, #tpu.memory_space<vmem>>, vector<1x16x256xbf16>
    %5 = vector.shape_cast %4 : vector<1x16x256xbf16> to vector<16x256xbf16>
    %cst_6 = arith.constant dense<0.000000e+00> : vector<16x1024xf32>
    %6 = tpu.matmul %5, %0, %cst_6 {dimension_numbers = #tpu.dot_dimension_numbers<[1], [0], [0], [1], [0, 0, 1, 1], [], []>} : vector<16x256xbf16>, vector<256x1024xbf16>, vector<16x1024xf32> -> vector<16x1024xf32>
    %7 = arith.maximumf %3, %6 : vector<16x1024xf32>
    %8 = vector.extract_strided_slice %7 {offsets = [0, 0], sizes = [16, 512], strides = [1, 1]} : vector<16x1024xf32> to vector<16x512xf32>
    %9 = vector.extract_strided_slice %7 {offsets = [0, 512], sizes = [16, 512], strides = [1, 1]} : vector<16x1024xf32> to vector<16x512xf32>
    %10 = arith.maximumf %8, %9 : vector<16x512xf32>
    %cst_7 = arith.constant 0.000000e+00 : f32
    %11 = vector.broadcast %cst_7 : f32 to vector<16x512xf32>
    %12 = arith.maximumf %10, %11 : vector<16x512xf32>
    %c0_8 = arith.constant 0 : index
    %c0_9 = arith.constant 0 : index
    %13 = vector.load %arg3[%c0_8, %c0_9] : memref<16x512xf32, #tpu.memory_space<vmem>>, vector<16x512xf32>
    tpu.vector_store %arg3[%c0_8, %c0_9], %12 {strides = array<i32>} : memref<16x512xf32, #tpu.memory_space<vmem>>, vector<16x512xf32>,
    return
  }
  func.func @transform_0(%arg0: i32) -> (i32, i32, i32) {
    %c0_i32 = arith.constant 0 : i32
    %c0_i32_0 = arith.constant 0 : i32
    %c0_i32_1 = arith.constant 0 : i32
    return %c0_i32, %arg0, %c0_i32_0 : i32, i32, i32
  }
  func.func @transform_1(%arg0: i32) -> (i32, i32) {
    %c0_i32 = arith.constant 0 : i32
    %c0_i32_0 = arith.constant 0 : i32
    %c0_i32_1 = arith.constant 0 : i32
    return %c0_i32, %c0_i32_0 : i32, i32
  }
  func.func @transform_2(%arg0: i32) -> (i32, i32) {
    %c0_i32 = arith.constant 0 : i32
    %c0_i32_0 = arith.constant 0 : i32
    return %arg0, %c0_i32 : i32, i32
  }
}

</mosaic_0001>

<bundles_post_ra>
// kernel: forward.1
= control target key start
LH: loop header
LB: loop body
LE: loop exit
PB: predicated region body
PF: predicated region fallthrough
CT: control target
= control target key end

     0   :  { %s3389_s1 = inlined_call_operand.vmem [shape: bf16[256,1024], index: 1, kind: input, shape index: {}]   ;;  %s3390_s0 = inlined_call_operand.vmem [shape: bf16[2,16,256], index: 0, kind: input, shape index: {}]   ;;  %s3391_s2 = inlined_call_operand.vmem [shape: f32[16,512], index: 2, kind: output, shape index: {}]  }
   0x1   :  { %v1530_v0 = vld [vmem:[%s3389_s1 + $0x1c0] sm:$0xf]  ;;  %v1882_v5 = vld [vmem:[%s3389_s1 + $0x1c4] sm:$0xf] }
   0x2   :  { %v1886_v1 = vld [vmem:[%s3389_s1 + $0x1dc] sm:$0xf0]  ;;  %v1532_v6 = vld [vmem:[%s3389_s1 + $0x1e0] sm:$0xf0] }
   0x3   :  { %v1786_v2 = vld [vmem:[%s3389_s1 + $0x3c0] sm:$0xf]  ;;  %v1982_v3 = vor.u32 %v1886_v1, %v1530_v0  ;;  %v1995_v8 = vor.u32 %v1882_v5, %v1532_v6  ;;  %v1946_v9 = vld [vmem:[%s3389_s1 + $0x3c4] sm:$0xf] }
   0x4   :  { %v1950_v4 = vld [vmem:[%s3389_s1 + $0x3dc] sm:$0xf0]  ;;  %v1788_v10 = vld [vmem:[%s3389_s1 + $0x3e0] sm:$0xf0] }
   0x5   :  { %v1993_v7 = vor.u32 %v1950_v4, %v1786_v2  ;;  %v1498_v11 = vld [vmem:[%s3389_s1 + $0x180] sm:$0xf]  ;;  %791 = vmatpush.bf16.msra.mxu0 %v1982_v3  ;;  %v2007_v12 = vor.u32 %v1946_v9, %v1788_v10  ;;  %819 = vmatpush.bf16.msra.mxu2 %v1995_v8  ;;  %v1874_v18 = vld [vmem:[%s3389_s1 + $0x184] sm:$0xf] }
   0x6   :  { %v1878_v13 = vld [vmem:[%s3389_s1 + $0x19c] sm:$0xf0]  ;;  %v1500_v19 = vld [vmem:[%s3389_s1 + $0x1a0] sm:$0xf0] }
   0x7   :  { %v1754_v14 = vld [vmem:[%s3389_s1 + $0x380] sm:$0xf]  ;;  %805 = vmatpush.bf16.msra.mxu1 %v1993_v7  ;;  %v2020_v16 = vor.u32 %v1878_v13, %v1498_v11  ;;  %v1938_v20 = vld [vmem:[%s3389_s1 + $0x384] sm:$0xf]  ;;  %833 = vmatpush.bf16.msra.mxu3 %v2007_v12  ;;  %v2034_v21 = vor.u32 %v1874_v18, %v1500_v19 }
   0x8   :  { %v1942_v15 = vld [vmem:[%s3389_s1 + $0x39c] sm:$0xf0]  ;;  %v1756_v22 = vld [vmem:[%s3389_s1 + $0x3a0] sm:$0xf0] }
   0x9   :  { %v2022_v17 = vor.u32 %v1942_v15, %v1754_v14  ;;  %v1466_v23 = vld [vmem:[%s3389_s1 + $0x140] sm:$0xf]  ;;  %v2045_v25 = vor.u32 %v1938_v20, %v1756_v22  ;;  %v1866_v28 = vld [vmem:[%s3389_s1 + $0x144] sm:$0xf]  ;;  %792 = vmatpush.bf16.msra.mxu0 %v2020_v16  ;;  %820 = vmatpush.bf16.msra.mxu2 %v2034_v21 }
   0xa   :  { %v1870_v24 = vld [vmem:[%s3389_s1 + $0x15c] sm:$0xf0]  ;;  %v1468_v30 = vld [vmem:[%s3389_s1 + $0x160] sm:$0xf0] }
   0xb   :  { %v1722_v26 = vld [vmem:[%s3389_s1 + $0x340] sm:$0xf]  ;;  %v2057_v29 = vor.u32 %v1870_v24, %v1466_v23  ;;  %v1930_v31 = vld [vmem:[%s3389_s1 + $0x344] sm:$0xf]  ;;  %806 = vmatpush.bf16.msra.mxu1 %v2022_v17  ;;  %v2072_v34 = vor.u32 %v1866_v28, %v1468_v30  ;;  %834 = vmatpush.bf16.msra.mxu3 %v2045_v25 }
   0xc   :  { %v1934_v27 = vld [vmem:[%s3389_s1 + $0x35c] sm:$0xf0]  ;;  %v1724_v32 = vld [vmem:[%s3389_s1 + $0x360] sm:$0xf0] }
   0xd   :  { %v2070_v33 = vor.u32 %v1934_v27, %v1722_v26  ;;  %v1434_v35 = vld [vmem:[%s3389_s1 + $0x100] sm:$0xf]  ;;  %v2084_v38 = vor.u32 %v1930_v31, %v1724_v32  ;;  %v1858_v40 = vld [vmem:[%s3389_s1 + $0x104] sm:$0xf]  ;;  %793 = vmatpush.bf16.msra.mxu0 %v2057_v29  ;;  %821 = vmatpush.bf16.msra.mxu2 %v2072_v34 }
   0xe   :  { %v1862_v36 = vld [vmem:[%s3389_s1 + $0x11c] sm:$0xf0]  ;;  %v1436_v41 = vld [vmem:[%s3389_s1 + $0x120] sm:$0xf0] }
   0xf   :  { %v1690_v37 = vld [vmem:[%s3389_s1 + $0x300] sm:$0xf]  ;;  %v1922_v42 = vld [vmem:[%s3389_s1 + $0x304] sm:$0xf]  ;;  %v2102_v44 = vor.u32 %v1862_v36, %v1434_v35  ;;  %807 = vmatpush.bf16.msra.mxu1 %v2070_v33  ;;  %v2108_v46 = vor.u32 %v1858_v40, %v1436_v41  ;;  %835 = vmatpush.bf16.msra.mxu3 %v2084_v38  ;;  %v1538_v40 = vld [vmem:[%s3389_s1 + $0x1c8] sm:$0xf] }
  0x10   :  { %v1926_v39 = vld [vmem:[%s3389_s1 + $0x31c] sm:$0xf0]  ;;  %v1692_v43 = vld [vmem:[%s3389_s1 + $0x320] sm:$0xf0]  ;;  %v1887_v41 = vld [vmem:[%s3389_s1 + $0x1e4] sm:$0xf0] }
  0x11   :  { %v2106_v45 = vor.u32 %v1926_v39, %v1690_v37  ;;  %v1402_v47 = vld [vmem:[%s3389_s1 + $0xc0] sm:$0xf]  ;;  %v2120_v50 = vor.u32 %v1922_v42, %v1692_v43  ;;  %v1850_v52 = vld [vmem:[%s3389_s1 + $0xc4] sm:$0xf]  ;;  %794 = vmatpush.bf16.msra.mxu0 %v2102_v44  ;;  %822 = vmatpush.bf16.msra.mxu2 %v2108_v46  ;;  %v1794_v42 = vld [vmem:[%s3389_s1 + $0x3c8] sm:$0xf] }
  0x12   :  { %v1854_v48 = vld [vmem:[%s3389_s1 + $0xdc] sm:$0xf0]  ;;  %v1404_v53 = vld [vmem:[%s3389_s1 + $0xe0] sm:$0xf0] }
  0x13   :  { %v1658_v49 = vld [vmem:[%s3389_s1 + $0x2c0] sm:$0xf]  ;;  %v1914_v54 = vld [vmem:[%s3389_s1 + $0x2c4] sm:$0xf]  ;;  %v2138_v56 = vor.u32 %v1854_v48, %v1402_v47  ;;  %808 = vmatpush.bf16.msra.mxu1 %v2106_v45  ;;  %v2144_v58 = vor.u32 %v1850_v52, %v1404_v53  ;;  %836 = vmatpush.bf16.msra.mxu3 %v2120_v50  ;;  %v1951_v47 = vld [vmem:[%s3389_s1 + $0x3e4] sm:$0xf0] }
  0x14   :  { %v1918_v51 = vld [vmem:[%s3389_s1 + $0x2dc] sm:$0xf0]  ;;  %v1660_v55 = vld [vmem:[%s3389_s1 + $0x2e0] sm:$0xf0]  ;;  %v1883_v48 = vld [vmem:[%s3389_s1 + $0x1cc] sm:$0xf] }
  0x15   :  { %v2142_v57 = vor.u32 %v1918_v51, %v1658_v49  ;;  %v1370_v59 = vld [vmem:[%s3389_s1 + $0x80] sm:$0xf]  ;;  %v2156_v62 = vor.u32 %v1914_v54, %v1660_v55  ;;  %v1842_v0 = vld [vmem:[%s3389_s1 + $0x84] sm:$0xf]  ;;  %795 = vmatpush.bf16.msra.mxu0 %v2138_v56  ;;  %823 = vmatpush.bf16.msra.mxu2 %v2144_v58  ;;  %v1540_v49 = vld [vmem:[%s3389_s1 + $0x1e8] sm:$0xf0] }
  0x16   :  { %v1846_v60 = vld [vmem:[%s3389_s1 + $0x9c] sm:$0xf0]  ;;  %v1372_v1 = vld [vmem:[%s3389_s1 + $0xa0] sm:$0xf0]  ;;  %v1947_v53 = vld [vmem:[%s3389_s1 + $0x3cc] sm:$0xf] }
  0x17   :  { %v1626_v61 = vld [vmem:[%s3389_s1 + $0x280] sm:$0xf]  ;;  %v1906_v2 = vld [vmem:[%s3389_s1 + $0x284] sm:$0xf]  ;;  %v2174_v5 = vor.u32 %v1846_v60, %v1370_v59  ;;  %809 = vmatpush.bf16.msra.mxu1 %v2142_v57  ;;  %v2180_v9 = vor.u32 %v1842_v0, %v1372_v1  ;;  %837 = vmatpush.bf16.msra.mxu3 %v2156_v62  ;;  %v1796_v54 = vld [vmem:[%s3389_s1 + $0x3e8] sm:$0xf0]  ;;  %v2281_v59 = vor.u32 %v1887_v41, %v1538_v40 }
  0x18   :  { %v1910_v63 = vld [vmem:[%s3389_s1 + $0x29c] sm:$0xf0]  ;;  %v1628_v4 = vld [vmem:[%s3389_s1 + $0x2a0] sm:$0xf0]  ;;  %v2283_v60 = vor.u32 %v1951_v47, %v1794_v42  ;;  %v1879_v0 = vld [vmem:[%s3389_s1 + $0x1a4] sm:$0xf0] }
  0x19   :  { %v2178_v6 = vor.u32 %v1910_v63, %v1626_v61  ;;  %v1338_v10 = vld [vmem:[%s3389_s1 + $0x40] sm:$0xf]  ;;  %v2192_v14 = vor.u32 %v1906_v2, %v1628_v4  ;;  %v1834_v18 = vld [vmem:[%s3389_s1 + $0x44] sm:$0xf]  ;;  %796 = vmatpush.bf16.msra.mxu0 %v2174_v5  ;;  %824 = vmatpush.bf16.msra.mxu2 %v2180_v9  ;;  %v2285_v61 = vor.u32 %v1883_v48, %v1540_v49  ;;  %v1506_v63 = vld [vmem:[%s3389_s1 + $0x188] sm:$0xf] }
  0x1a   :  { %v1838_v11 = vld [vmem:[%s3389_s1 + $0x5c] sm:$0xf0]  ;;  %v1340_v19 = vld [vmem:[%s3389_s1 + $0x60] sm:$0xf0]  ;;  %v1762_v1 = vld [vmem:[%s3389_s1 + $0x388] sm:$0xf]  ;;  %v2297_v2 = vor.u32 %v1947_v53, %v1796_v54 }
  0x1b   :  { %v1594_v13 = vld [vmem:[%s3389_s1 + $0x240] sm:$0xf]  ;;  %v1898_v20 = vld [vmem:[%s3389_s1 + $0x244] sm:$0xf]  ;;  %v2210_v23 = vor.u32 %v1838_v11, %v1338_v10  ;;  %810 = vmatpush.bf16.msra.mxu1 %v2178_v6  ;;  %v2222_v28 = vor.u32 %v1834_v18, %v1340_v19  ;;  %838 = vmatpush.bf16.msra.mxu3 %v2192_v14  ;;  %v1943_v4 = vld [vmem:[%s3389_s1 + $0x3a4] sm:$0xf0]  ;;  %v2318_v18 = vor.u32 %v1879_v0, %v1506_v63 }
  0x1c   :  { %v1902_v15 = vld [vmem:[%s3389_s1 + $0x25c] sm:$0xf0]  ;;  %v1596_v22 = vld [vmem:[%s3389_s1 + $0x260] sm:$0xf0]  ;;  %v1875_v10 = vld [vmem:[%s3389_s1 + $0x18c] sm:$0xf]  ;;  %v2322_v19 = vor.u32 %v1943_v4, %v1762_v1 }
  0x1d   :  { %v1306_v24 = vld [vmem:[%s3389_s1] sm:$0xf]  ;;  %v2220_v27 = vor.u32 %v1902_v15, %v1594_v13  ;;  %v1826_v32 = vld [vmem:[%s3389_s1 + $0x4] sm:$0xf]  ;;  %v2234_v35 = vor.u32 %v1898_v20, %v1596_v22  ;;  %797 = vmatpush.bf16.msra.mxu0 %v2210_v23  ;;  %825 = vmatpush.bf16.msra.mxu2 %v2222_v28  ;;  %v1508_v11 = vld [vmem:[%s3389_s1 + $0x1a8] sm:$0xf0] }
  0x1e   :  { %v1830_v26 = vld [vmem:[%s3389_s1 + $0x1c] sm:$0xf0]  ;;  %v1308_v36 = vld [vmem:[%s3389_s1 + $0x20] sm:$0xf0]  ;;  %v1939_v13 = vld [vmem:[%s3389_s1 + $0x38c] sm:$0xf]  ;;  %v2324_v20 = vor.u32 %v1875_v10, %v1508_v11 }
  0x1f   :  { %v1562_v30 = vld [vmem:[%s3389_s1 + $0x200] sm:$0xf]  ;;  %v1890_v37 = vld [vmem:[%s3389_s1 + $0x204] sm:$0xf]  ;;  %v2255_v43 = vor.u32 %v1830_v26, %v1306_v24  ;;  %811 = vmatpush.bf16.msra.mxu1 %v2220_v27  ;;  %v2270_v52 = vor.u32 %v1826_v32, %v1308_v36  ;;  %839 = vmatpush.bf16.msra.mxu3 %v2234_v35  ;;  %v1764_v15 = vld [vmem:[%s3389_s1 + $0x3a8] sm:$0xf0] }
  0x20   :  { %v1894_v31 = vld [vmem:[%s3389_s1 + $0x21c] sm:$0xf0]  ;;  %v1564_v39 = vld [vmem:[%s3389_s1 + $0x220] sm:$0xf0]  ;;  %v1474_v22 = vld [vmem:[%s3389_s1 + $0x148] sm:$0xf] }
  0x21   :  { %v2268_v51 = vor.u32 %v1894_v31, %v1562_v30  ;;  %v2279_v55 = vor.u32 %v1890_v37, %v1564_v39  ;;  %798 = vmatpush.bf16.msra.mxu0 %v2255_v43  ;;  %826 = vmatpush.bf16.msra.mxu2 %v2270_v52  ;;  %v1871_v24 = vld [vmem:[%s3389_s1 + $0x164] sm:$0xf0]  ;;  %v2336_v30 = vor.u32 %v1939_v13, %v1764_v15  ;;  %v1867_v32 = vld [vmem:[%s3389_s1 + $0x14c] sm:$0xf]  ;;  %v1298_v47 = vld [vmem:[%s3390_s0] sm:$0xf] }
  0x22   :  { %v1730_v26 = vld [vmem:[%s3389_s1 + $0x348] sm:$0xf]  ;;  %v1476_v36 = vld [vmem:[%s3389_s1 + $0x168] sm:$0xf0]  ;;  %v2357_v41 = vor.u32 %v1871_v24, %v1474_v22  ;;  %v1954_v0 = vld [vmem:[%s3390_s0 + $0x4] sm:$0xf] }
  0x23   :  { %812 = vmatpush.bf16.msra.mxu1 %v2268_v51  ;;  %840 = vmatpush.bf16.msra.mxu3 %v2279_v55  ;;  %v1935_v31 = vld [vmem:[%s3389_s1 + $0x364] sm:$0xf0]  ;;  %v1931_v37 = vld [vmem:[%s3389_s1 + $0x34c] sm:$0xf]  ;;  %v2372_v53 = vor.u32 %v1867_v32, %v1476_v36 }
  0x24   :  { %v1732_v39 = vld [vmem:[%s3389_s1 + $0x368] sm:$0xf0]  ;;  %v1442_v40 = vld [vmem:[%s3389_s1 + $0x108] sm:$0xf]  ;;  %3466 = vst [vmem:[#allocation2_spill] sm:$0xff] %v2357_v41  ;;  %v2370_v49 = vor.u32 %v1935_v31, %v1730_v26 }
  0x25   :  { %847 = vmatpush.bf16.msrb.mxu0 %v2281_v59  ;;  %875 = vmatpush.bf16.msrb.mxu2 %v2285_v61  ;;  %v1863_v42 = vld [vmem:[%s3389_s1 + $0x124] sm:$0xf0]  ;;  %3468 = vst [vmem:[#allocation4_spill] sm:$0xff] %v2372_v53  ;;  %v1300_v1 = vld [vmem:[%s3390_s0 + $0x8] sm:$0xf0]  ;;  %v2386_v4 = vor.u32 %v1931_v37, %v1732_v39 }
  0x26   :  { %v1955_v48 = vld [vmem:[%s3390_s0 + $0x4] sm:$0xf0]  ;;  %3467 = vst [vmem:[#allocation3_spill] sm:$0xff] %v2370_v49  ;;  %v1859_v11 = vld [vmem:[%s3389_s1 + $0x10c] sm:$0xf]  ;;  %v2397_v15 = vor.u32 %v1954_v0, %v1300_v1  ;;  %v2408_v26 = vor.u32 %v1863_v42, %v1442_v40 }
  0x27   :  { %861 = vmatpush.bf16.msrb.mxu1 %v2283_v60  ;;  %889 = vmatpush.bf16.msrb.mxu3 %v2297_v2  ;;  %v1698_v54 = vld [vmem:[%s3389_s1 + $0x308] sm:$0xf]  ;;  %v2377_v63 = vor.u32 %v1955_v48, %v1298_v47  ;;  %3469 = vst [vmem:[#allocation5_spill] sm:$0xff] %v2386_v4  ;;  %v1444_v13 = vld [vmem:[%s3389_s1 + $0x128] sm:$0xf0] }
  0x28   :  { %v1927_v10 = vld [vmem:[%s3389_s1 + $0x324] sm:$0xf0]  ;;  %v1923_v22 = vld [vmem:[%s3389_s1 + $0x30c] sm:$0xf]  ;;  %3470 = vst [vmem:[#allocation6_spill] sm:$0xff] %v2408_v26  ;;  %841 = vmatmul.bf16.vlgmr.msra.gmra.mxu3 %v2397_v15  ;;  %v2415_v32 = vor.u32 %v1859_v11, %v1444_v13  ;;  %813 = vmatmul.bf16.vlgmr.msra.gmra.mxu1 %v2397_v15 }
  0x29   :  { %848 = vmatpush.bf16.msrb.mxu0 %v2318_v18  ;;  %876 = vmatpush.bf16.msrb.mxu2 %v2324_v20  ;;  %v1700_v24 = vld [vmem:[%s3389_s1 + $0x328] sm:$0xf0]  ;;  %v2413_v31 = vor.u32 %v1927_v10, %v1698_v54  ;;  %v1410_v36 = vld [vmem:[%s3389_s1 + $0xc8] sm:$0xf] }
  0x2a   :  { %827 = vmatmul.bf16.vlgmr.msra.gmra.mxu2 %v2377_v63  ;;  %799 = vmatmul.bf16.vlgmr.msra.gmra.mxu0 %v2377_v63  ;;  %3472 = vst [vmem:[#allocation8_spill] sm:$0xff] %v2415_v32  ;;  %v1855_v37 = vld [vmem:[%s3389_s1 + $0xe4] sm:$0xf0]  ;;  %v2427_v40 = vor.u32 %v1923_v22, %v1700_v24  ;;  %v1851_v47 = vld [vmem:[%s3389_s1 + $0xcc] sm:$0xf] }
  0x2b   :  { %862 = vmatpush.bf16.msrb.mxu1 %v2322_v19  ;;  %890 = vmatpush.bf16.msrb.mxu3 %v2336_v30  ;;  %3471 = vst [vmem:[#allocation7_spill] sm:$0xff] %v2413_v31  ;;  %v1666_v39 = vld [vmem:[%s3389_s1 + $0x2c8] sm:$0xf]  ;;  %v1412_v48 = vld [vmem:[%s3389_s1 + $0xe8] sm:$0xf0]  ;;  %v2446_v1 = vor.u32 %v1855_v37, %v1410_v36 }
  0x2c   :  { %3473 = vst [vmem:[#allocation9_spill] sm:$0xff] %v2427_v40  ;;  %v1919_v42 = vld [vmem:[%s3389_s1 + $0x2e4] sm:$0xf0]  ;;  %v1915_v54 = vld [vmem:[%s3389_s1 + $0x2cc] sm:$0xf]  ;;  %v2452_v11 = vor.u32 %v1851_v47, %v1412_v48 }
  0x2d   :  { %849 = vmatpush.bf16.msrb.mxu0 %v2357_v41  ;;  %877 = vmatpush.bf16.msrb.mxu2 %v2372_v53  ;;  %v1668_v0 = vld [vmem:[%s3389_s1 + $0x2e8] sm:$0xf0]  ;;  %3474 = vst [vmem:[#allocation10_spill] sm:$0xff] %v2446_v1  ;;  %v2450_v10 = vor.u32 %v1919_v42, %v1666_v39  ;;  %v1378_v13 = vld [vmem:[%s3389_s1 + $0x88] sm:$0xf] }
  0x2e   :  { %3476 = vst [vmem:[#allocation12_spill] sm:$0xff] %v2452_v11  ;;  %v1847_v22 = vld [vmem:[%s3389_s1 + $0xa4] sm:$0xf0]  ;;  %v2464_v36 = vor.u32 %v1915_v54, %v1668_v0  ;;  %v1843_v39 = vld [vmem:[%s3389_s1 + $0x8c] sm:$0xf] }
  0x2f   :  { %863 = vmatpush.bf16.msrb.mxu1 %v2370_v49  ;;  %891 = vmatpush.bf16.msrb.mxu3 %v2386_v4  ;;  %3475 = vst [vmem:[#allocation11_spill] sm:$0xff] %v2450_v10  ;;  %v1634_v24 = vld [vmem:[%s3389_s1 + $0x288] sm:$0xf]  ;;  %v1380_v42 = vld [vmem:[%s3389_s1 + $0xa8] sm:$0xf0]  ;;  %v2482_v54 = vor.u32 %v1847_v22, %v1378_v13 }
  0x30   :  { %3477 = vst [vmem:[#allocation13_spill] sm:$0xff] %v2464_v36  ;;  %v1911_v37 = vld [vmem:[%s3389_s1 + $0x2a4] sm:$0xf0]  ;;  %v1907_v47 = vld [vmem:[%s3389_s1 + $0x28c] sm:$0xf] }
  0x31   :  { %850 = vmatpush.bf16.msrb.mxu0 %v2408_v26  ;;  %878 = vmatpush.bf16.msrb.mxu2 %v2415_v32  ;;  %v1636_v48 = vld [vmem:[%s3389_s1 + $0x2a8] sm:$0xf0]  ;;  %3478 = vst [vmem:[#allocation14_spill] sm:$0xff] %v2482_v54  ;;  %v2486_v0 = vor.u32 %v1911_v37, %v1634_v24  ;;  %v1346_v32 = vld [vmem:[%s3389_s1 + $0x48] sm:$0xf] }
  0x32   :  { %v1602_v13 = vld [vmem:[%s3389_s1 + $0x248] sm:$0xf]  ;;  %v2500_v22 = vor.u32 %v1907_v47, %v1636_v48  ;;  %v1835_v37 = vld [vmem:[%s3389_s1 + $0x4c] sm:$0xf]  ;;  %v1884_v26 = vld [vmem:[%s3389_s1 + $0x1d4] sm:$0xf] }
  0x33   :  { %864 = vmatpush.bf16.msrb.mxu1 %v2413_v31  ;;  %892 = vmatpush.bf16.msrb.mxu3 %v2427_v40  ;;  %3479 = vst [vmem:[#allocation15_spill] sm:$0xff] %v2486_v0  ;;  %v2488_v40 = vor.u32 %v1843_v39, %v1380_v42  ;;  %v1839_v31 = vld [vmem:[%s3389_s1 + $0x64] sm:$0xf0]  ;;  %v1348_v39 = vld [vmem:[%s3389_s1 + $0x68] sm:$0xf0] }
  0x34   :  { %3481 = vst [vmem:[#allocation17_spill] sm:$0xff] %v2500_v22  ;;  %v1903_v24 = vld [vmem:[%s3389_s1 + $0x264] sm:$0xf0]  ;;  %v1899_v42 = vld [vmem:[%s3389_s1 + $0x24c] sm:$0xf]  ;;  %v2518_v48 = vor.u32 %v1839_v31, %v1346_v32 }
  0x35   :  { %851 = vmatpush.bf16.msrb.mxu0 %v2446_v1  ;;  %879 = vmatpush.bf16.msrb.mxu2 %v2452_v11  ;;  %3480 = vst [vmem:[#allocation16_spill] sm:$0xff] %v2488_v40  ;;  %v1604_v47 = vld [vmem:[%s3389_s1 + $0x268] sm:$0xf0]  ;;  %v1831_v11 = vld [vmem:[%s3389_s1 + $0x24] sm:$0xf0]  ;;  %v2530_v1 = vor.u32 %v1835_v37, %v1348_v39 }
  0x36   :  { %3482 = vst [vmem:[#allocation18_spill] sm:$0xff] %v2518_v48  ;;  %v1570_v31 = vld [vmem:[%s3389_s1 + $0x208] sm:$0xf]  ;;  %v1572_v37 = vld [vmem:[%s3389_s1 + $0x228] sm:$0xf0] }
  0x37   :  { %865 = vmatpush.bf16.msrb.mxu1 %v2450_v10  ;;  %893 = vmatpush.bf16.msrb.mxu3 %v2464_v36  ;;  %v1314_v36 = vld [vmem:[%s3389_s1 + $0x8] sm:$0xf]  ;;  %v2528_v10 = vor.u32 %v1903_v24, %v1602_v13  ;;  %3484 = vst [vmem:[#allocation20_spill] sm:$0xff] %v2530_v1  ;;  %v1316_v13 = vld [vmem:[%s3389_s1 + $0x28] sm:$0xf0] }
  0x38   :  { %v1895_v32 = vld [vmem:[%s3389_s1 + $0x224] sm:$0xf0]  ;;  %v1891_v24 = vld [vmem:[%s3389_s1 + $0x20c] sm:$0xf]  ;;  %v1546_v39 = vld [vmem:[%s3389_s1 + $0x1d0] sm:$0xf] }
  0x39   :  { %852 = vmatpush.bf16.msrb.mxu0 %v2482_v54  ;;  %880 = vmatpush.bf16.msrb.mxu2 %v2488_v40  ;;  %3483 = vst [vmem:[#allocation19_spill] sm:$0xff] %v2528_v10  ;;  %v1827_v54 = vld [vmem:[%s3389_s1 + $0xc] sm:$0xf]  ;;  %v1952_v40 = vld [vmem:[%s3389_s1 + $0x3ec] sm:$0xf0]  ;;  %v2576_v53 = vor.u32 %v1895_v32, %v1570_v31  ;;  %v2587_v49 = vor.u32 %v1891_v24, %v1572_v37 }
  0x3a   :  { %v1548_v4 = vld [vmem:[%s3389_s1 + $0x1f0] sm:$0xf0]  ;;  %v1880_v32 = vld [vmem:[%s3389_s1 + $0x1ac] sm:$0xf0] }
  0x3b   :  { %866 = vmatpush.bf16.msrb.mxu1 %v2486_v0  ;;  %894 = vmatpush.bf16.msrb.mxu3 %v2500_v22  ;;  %v2542_v0 = vor.u32 %v1899_v42, %v1604_v47  ;;  %v1888_v42 = vld [vmem:[%s3389_s1 + $0x1ec] sm:$0xf0]  ;;  %v2563_v22 = vor.u32 %v1831_v11, %v1314_v36  ;;  %3487 = vst [vmem:[#allocation23_spill] sm:$0xff] %v2576_v53  ;;  %v1948_v36 = vld [vmem:[%s3389_s1 + $0x3d4] sm:$0xf] }
  0x3c   :  { %v1802_v47 = vld [vmem:[%s3389_s1 + $0x3d0] sm:$0xf]  ;;  %v2578_v11 = vor.u32 %v1827_v54, %v1316_v13  ;;  %3489 = vst [vmem:[#allocation25_spill] sm:$0xff] %v2587_v49  ;;  %v2589_v41 = vor.u32 %v1888_v42, %v1546_v39  ;;  %v2593_v31 = vor.u32 %v1884_v26, %v1548_v4  ;;  %v1876_v26 = vld [vmem:[%s3389_s1 + $0x194] sm:$0xf] }
  0x3d   :  { %3485 = vst [vmem:[#allocation21_spill] sm:$0xff] %v2542_v0  ;;  %853 = vmatpush.bf16.msrb.mxu0 %v2518_v48  ;;  %881 = vmatpush.bf16.msrb.mxu2 %v2530_v1  ;;  %v1804_v48 = vld [vmem:[%s3389_s1 + $0x3f0] sm:$0xf0]  ;;  %v1514_v54 = vld [vmem:[%s3389_s1 + $0x190] sm:$0xf] }
  0x3e   :  { %3486 = vst [vmem:[#allocation22_spill] sm:$0xff] %v2563_v22  ;;  %v1770_v13 = vld [vmem:[%s3389_s1 + $0x390] sm:$0xf]  ;;  %v2605_v24 = vor.u32 %v1948_v36, %v1804_v48  ;;  %v1940_v48 = vld [vmem:[%s3389_s1 + $0x394] sm:$0xf]  ;;  %v2626_v39 = vor.u32 %v1880_v32, %v1514_v54 }
  0x3f   :  { %867 = vmatpush.bf16.msrb.mxu1 %v2528_v10  ;;  %3488 = vst [vmem:[#allocation24_spill] sm:$0xff] %v2578_v11  ;;  %895 = vmatpush.bf16.msrb.mxu3 %v2542_v0  ;;  %v2591_v10 = vor.u32 %v1952_v40, %v1802_v47  ;;  %v1944_v4 = vld [vmem:[%s3389_s1 + $0x3ac] sm:$0xf0]  ;;  %v1516_v40 = vld [vmem:[%s3389_s1 + $0x1b0] sm:$0xf0] }
  0x40   :  { %3490 = vst [vmem:[#allocation26_spill] sm:$0xff] %v2589_v41  ;;  %v1772_v37 = vld [vmem:[%s3389_s1 + $0x3b0] sm:$0xf0]  ;;  %v2630_v42 = vor.u32 %v1944_v4, %v1770_v13  ;;  %v2632_v47 = vor.u32 %v1876_v26, %v1516_v40  ;;  %v1482_v36 = vld [vmem:[%s3389_s1 + $0x150] sm:$0xf] }
  0x41   :  { %3491 = vst [vmem:[#allocation27_spill] sm:$0xff] %v2591_v10  ;;  %854 = vmatpush.bf16.msrb.mxu0 %v2563_v22  ;;  %882 = vmatpush.bf16.msrb.mxu2 %v2578_v11  ;;  %v1738_v54 = vld [vmem:[%s3389_s1 + $0x350] sm:$0xf]  ;;  %v2644_v32 = vor.u32 %v1940_v48, %v1772_v37  ;;  %v1868_v4 = vld [vmem:[%s3389_s1 + $0x154] sm:$0xf] }
  0x42   :  { %3492 = vst [vmem:[#allocation28_spill] sm:$0xff] %v2593_v31  ;;  %v1936_v13 = vld [vmem:[%s3389_s1 + $0x36c] sm:$0xf0]  ;;  %v1484_v26 = vld [vmem:[%s3389_s1 + $0x170] sm:$0xf0] }
  0x43   :  { %3493 = vst [vmem:[#allocation29_spill] sm:$0xff] %v2605_v24  ;;  %868 = vmatpush.bf16.msrb.mxu1 %v2576_v53  ;;  %896 = vmatpush.bf16.msrb.mxu3 %v2587_v49  ;;  %v1872_v49 = vld [vmem:[%s3389_s1 + $0x16c] sm:$0xf0]  ;;  %v1932_v40 = vld [vmem:[%s3389_s1 + $0x354] sm:$0xf] }
  0x44   :  { %3494 = vst [vmem:[#allocation30_spill] sm:$0xff] %v2626_v39  ;;  %883 = vmatmul.bf16.vlgmr.msrb.gmra.mxu2 %v2377_v63  ;;  %v1740_v48 = vld [vmem:[%s3389_s1 + $0x370] sm:$0xf0]  ;;  %855 = vmatmul.bf16.vlgmr.msrb.gmra.mxu0 %v2377_v63  ;;  %v2665_v37 = vor.u32 %v1872_v49, %v1482_v36  ;;  %v1706_v49 = vld [vmem:[%s3389_s1 + $0x310] sm:$0xf] }
  0x45   :  { %903 = vmatpush.bf16.msra.mxu0 %v2589_v41  ;;  %931 = vmatpush.bf16.msra.mxu2 %v2593_v31  ;;  %3495 = vst [vmem:[#allocation31_spill] sm:$0xff] %v2630_v42  ;;  %v2672_v31 = vor.u32 %v1868_v4, %v1484_v26  ;;  %v2684_v36 = vor.u32 %v1932_v40, %v1740_v48  ;;  %v1452_v4 = vld [vmem:[%s3389_s1 + $0x130] sm:$0xf0]  ;;  %v1856_v41 = vld [vmem:[%s3389_s1 + $0xec] sm:$0xf0] }
  0x46   :  { %3496 = vst [vmem:[#allocation32_spill] sm:$0xff] %v2632_v47  ;;  %897 = vmatmul.bf16.vlgmr.msrb.gmra.mxu3 %v2397_v15  ;;  %869 = vmatmul.bf16.vlgmr.msrb.gmra.mxu1 %v2397_v15  ;;  %v1924_v26 = vld [vmem:[%s3389_s1 + $0x314] sm:$0xf]  ;;  %v1885_v11 = vld [vmem:[%s3389_s1 + $0x1dc] sm:$0xf] }
  0x47   :  { %917 = vmatpush.bf16.msra.mxu1 %v2591_v10  ;;  %945 = vmatpush.bf16.msra.mxu3 %v2605_v24  ;;  %3497 = vst [vmem:[#allocation33_spill] sm:$0xff] %v2644_v32  ;;  %v2670_v24 = vor.u32 %v1936_v13, %v1738_v54  ;;  %v1450_v10 = vld [vmem:[%s3389_s1 + $0x110] sm:$0xf]  ;;  %v1860_v13 = vld [vmem:[%s3389_s1 + $0x114] sm:$0xf] }
  0x48   :  { %3498 = vst [vmem:[#allocation34_spill] sm:$0xff] %v2665_v37  ;;  %v1928_v54 = vld [vmem:[%s3389_s1 + $0x32c] sm:$0xf0]  ;;  %v1708_v40 = vld [vmem:[%s3389_s1 + $0x330] sm:$0xf0] }
  0x49   :  { %904 = vmatpush.bf16.msra.mxu0 %v2626_v39  ;;  %932 = vmatpush.bf16.msra.mxu2 %v2632_v47  ;;  %3499 = vst [vmem:[#allocation35_spill] sm:$0xff] %v2670_v24  ;;  %v1864_v39 = vld [vmem:[%s3389_s1 + $0x12c] sm:$0xf0]  ;;  %v2708_v47 = vor.u32 %v1860_v13, %v1452_v4  ;;  %v1420_v13 = vld [vmem:[%s3389_s1 + $0xf0] sm:$0xf0] }
  0x4a   :  { %3500 = vst [vmem:[#allocation36_spill] sm:$0xff] %v2672_v31  ;;  %v2702_v48 = vor.u32 %v1864_v39, %v1450_v10  ;;  %v1674_v10 = vld [vmem:[%s3389_s1 + $0x2d0] sm:$0xf]  ;;  %v2720_v39 = vor.u32 %v1924_v26, %v1708_v40  ;;  %v1916_v4 = vld [vmem:[%s3389_s1 + $0x2d4] sm:$0xf] }
  0x4b   :  { %918 = vmatpush.bf16.msra.mxu1 %v2630_v42  ;;  %946 = vmatpush.bf16.msra.mxu3 %v2644_v32  ;;  %3501 = vst [vmem:[#allocation37_spill] sm:$0xff] %v2684_v36  ;;  %v2706_v32 = vor.u32 %v1928_v54, %v1706_v49  ;;  %v1418_v42 = vld [vmem:[%s3389_s1 + $0xd0] sm:$0xf]  ;;  %v1852_v54 = vld [vmem:[%s3389_s1 + $0xd4] sm:$0xf] }
  0x4c   :  { %3502 = vst [vmem:[#allocation38_spill] sm:$0xff] %v2702_v48  ;;  %v1920_v49 = vld [vmem:[%s3389_s1 + $0x2ec] sm:$0xf0]  ;;  %v1676_v26 = vld [vmem:[%s3389_s1 + $0x2f0] sm:$0xf0]  ;;  %v2738_v40 = vor.u32 %v1856_v41, %v1418_v42 }
  0x4d   :  { %905 = vmatpush.bf16.msra.mxu0 %v2665_v37  ;;  %933 = vmatpush.bf16.msra.mxu2 %v2672_v31  ;;  %3503 = vst [vmem:[#allocation39_spill] sm:$0xff] %v2706_v32  ;;  %v2744_v31 = vor.u32 %v1852_v54, %v1420_v13  ;;  %v1848_v37 = vld [vmem:[%s3389_s1 + $0xac] sm:$0xf0]  ;;  %v2756_v42 = vor.u32 %v1916_v4, %v1676_v26  ;;  %v1388_v54 = vld [vmem:[%s3389_s1 + $0xb0] sm:$0xf0] }
  0x4e   :  { %3504 = vst [vmem:[#allocation40_spill] sm:$0xff] %v2708_v47  ;;  %v1642_v41 = vld [vmem:[%s3389_s1 + $0x290] sm:$0xf]  ;;  %v1908_v13 = vld [vmem:[%s3389_s1 + $0x294] sm:$0xf] }
  0x4f   :  { %919 = vmatpush.bf16.msra.mxu1 %v2670_v24  ;;  %947 = vmatpush.bf16.msra.mxu3 %v2684_v36  ;;  %3505 = vst [vmem:[#allocation41_spill] sm:$0xff] %v2720_v39  ;;  %v2742_v36 = vor.u32 %v1920_v49, %v1674_v10  ;;  %v1386_v24 = vld [vmem:[%s3389_s1 + $0x90] sm:$0xf]  ;;  %v1844_v49 = vld [vmem:[%s3389_s1 + $0x94] sm:$0xf] }
  0x50   :  { %3506 = vst [vmem:[#allocation42_spill] sm:$0xff] %v2738_v40  ;;  %v1912_v10 = vld [vmem:[%s3389_s1 + $0x2ac] sm:$0xf0]  ;;  %v1644_v4 = vld [vmem:[%s3389_s1 + $0x2b0] sm:$0xf0]  ;;  %v2774_v26 = vor.u32 %v1848_v37, %v1386_v24 }
  0x51   :  { %906 = vmatpush.bf16.msra.mxu0 %v2702_v48  ;;  %934 = vmatpush.bf16.msra.mxu2 %v2708_v47  ;;  %3507 = vst [vmem:[#allocation43_spill] sm:$0xff] %v2742_v36  ;;  %v2780_v47 = vor.u32 %v1844_v49, %v1388_v54  ;;  %v1840_v48 = vld [vmem:[%s3389_s1 + $0x6c] sm:$0xf0]  ;;  %v2792_v37 = vor.u32 %v1908_v13, %v1644_v4  ;;  %v1356_v49 = vld [vmem:[%s3389_s1 + $0x70] sm:$0xf0] }
  0x52   :  { %3508 = vst [vmem:[#allocation44_spill] sm:$0xff] %v2744_v31  ;;  %v1610_v24 = vld [vmem:[%s3389_s1 + $0x250] sm:$0xf]  ;;  %v1900_v54 = vld [vmem:[%s3389_s1 + $0x254] sm:$0xf] }
  0x53   :  { %920 = vmatpush.bf16.msra.mxu1 %v2706_v32  ;;  %948 = vmatpush.bf16.msra.mxu3 %v2720_v39  ;;  %3509 = vst [vmem:[#allocation45_spill] sm:$0xff] %v2756_v42  ;;  %v2778_v39 = vor.u32 %v1912_v10, %v1642_v41  ;;  %v1354_v32 = vld [vmem:[%s3389_s1 + $0x50] sm:$0xf]  ;;  %v1836_v10 = vld [vmem:[%s3389_s1 + $0x54] sm:$0xf] }
  0x54   :  { %3510 = vst [vmem:[#allocation46_spill] sm:$0xff] %v2774_v26  ;;  %v1904_v41 = vld [vmem:[%s3389_s1 + $0x26c] sm:$0xf0]  ;;  %v1612_v13 = vld [vmem:[%s3389_s1 + $0x270] sm:$0xf0]  ;;  %v2810_v4 = vor.u32 %v1840_v48, %v1354_v32 }
  0x55   :  { %907 = vmatpush.bf16.msra.mxu0 %v2738_v40  ;;  %935 = vmatpush.bf16.msra.mxu2 %v2744_v31  ;;  %3511 = vst [vmem:[#allocation47_spill] sm:$0xff] %v2778_v39  ;;  %v1832_v31 = vld [vmem:[%s3389_s1 + $0x2c] sm:$0xf0]  ;;  %v2822_v40 = vor.u32 %v1836_v10, %v1356_v49  ;;  %v1580_v10 = vld [vmem:[%s3389_s1 + $0x230] sm:$0xf0] }
  0x56   :  { %3512 = vst [vmem:[#allocation48_spill] sm:$0xff] %v2780_v47  ;;  %v1578_v32 = vld [vmem:[%s3389_s1 + $0x210] sm:$0xf]  ;;  %v1554_v49 = vld [vmem:[%s3389_s1 + $0x1d8] sm:$0xf] }
  0x57   :  { %921 = vmatpush.bf16.msra.mxu1 %v2742_v36  ;;  %949 = vmatpush.bf16.msra.mxu3 %v2756_v42  ;;  %3513 = vst [vmem:[#allocation49_spill] sm:$0xff] %v2792_v37  ;;  %v1322_v42 = vld [vmem:[%s3389_s1 + $0x10] sm:$0xf]  ;;  %v2820_v36 = vor.u32 %v1904_v41, %v1610_v24  ;;  %v1324_v24 = vld [vmem:[%s3389_s1 + $0x30] sm:$0xf0] }
  0x58   :  { %3514 = vst [vmem:[#allocation50_spill] sm:$0xff] %v2810_v4  ;;  %v1896_v48 = vld [vmem:[%s3389_s1 + $0x22c] sm:$0xf0]  ;;  %v1892_v41 = vld [vmem:[%s3389_s1 + $0x214] sm:$0xf] }
  0x59   :  { %908 = vmatpush.bf16.msra.mxu0 %v2774_v26  ;;  %936 = vmatpush.bf16.msra.mxu2 %v2780_v47  ;;  %3515 = vst [vmem:[#allocation51_spill] sm:$0xff] %v2820_v36  ;;  %v1828_v26 = vld [vmem:[%s3389_s1 + $0x14] sm:$0xf]  ;;  %v1953_v47 = vld [vmem:[%s3389_s1 + $0x3f4] sm:$0xf0]  ;;  %v2868_v22 = vor.u32 %v1896_v48, %v1578_v32  ;;  %v2879_v0 = vor.u32 %v1892_v41, %v1580_v10 }
  0x5a   :  { %v1556_v53 = vld [vmem:[%s3389_s1 + $0x1f8] sm:$0xf0]  ;;  %v1881_v48 = vld [vmem:[%s3389_s1 + $0x1b4] sm:$0xf0] }
  0x5b   :  { %922 = vmatpush.bf16.msra.mxu1 %v2778_v39  ;;  %950 = vmatpush.bf16.msra.mxu3 %v2792_v37  ;;  %v2834_v39 = vor.u32 %v1900_v54, %v1612_v13  ;;  %v1889_v54 = vld [vmem:[%s3389_s1 + $0x1f4] sm:$0xf0]  ;;  %v2855_v37 = vor.u32 %v1832_v31, %v1322_v42  ;;  %v2870_v31 = vor.u32 %v1828_v26, %v1324_v24  ;;  %v1949_v42 = vld [vmem:[%s3389_s1 + $0x3dc] sm:$0xf] }
  0x5c   :  { %v1810_v13 = vld [vmem:[%s3389_s1 + $0x3d8] sm:$0xf]  ;;  %3516 = vst [vmem:[#allocation52_spill] sm:$0xff] %v2879_v0  ;;  %v2881_v1 = vor.u32 %v1889_v54, %v1554_v49  ;;  %v2885_v32 = vor.u32 %v1885_v11, %v1556_v53  ;;  %v1877_v11 = vld [vmem:[%s3389_s1 + $0x19c] sm:$0xf] }
  0x5d   :  { %909 = vmatpush.bf16.msra.mxu0 %v2810_v4  ;;  %937 = vmatpush.bf16.msra.mxu2 %v2822_v40  ;;  %v1812_v4 = vld [vmem:[%s3389_s1 + $0x3f8] sm:$0xf0]  ;;  %v1522_v26 = vld [vmem:[%s3389_s1 + $0x198] sm:$0xf] }
  0x5e   :  { %3517 = vst [vmem:[#allocation53_spill] sm:$0xff] %v2881_v1  ;;  %v1778_v24 = vld [vmem:[%s3389_s1 + $0x398] sm:$0xf]  ;;  %v2897_v41 = vor.u32 %v1949_v42, %v1812_v4  ;;  %v1941_v4 = vld [vmem:[%s3389_s1 + $0x39c] sm:$0xf]  ;;  %v2918_v49 = vor.u32 %v1881_v48, %v1522_v26 }
  0x5f   :  { %923 = vmatpush.bf16.msra.mxu1 %v2820_v36  ;;  %951 = vmatpush.bf16.msra.mxu3 %v2834_v39  ;;  %v2883_v36 = vor.u32 %v1953_v47, %v1810_v13  ;;  %3519 = vst [vmem:[#allocation55_spill] sm:$0xff] %v2885_v32  ;;  %v1945_v53 = vld [vmem:[%s3389_s1 + $0x3b4] sm:$0xf0]  ;;  %v1524_v47 = vld [vmem:[%s3389_s1 + $0x1b8] sm:$0xf0] }
  0x60   :  { %3520 = vst [vmem:[#allocation56_spill] sm:$0xff] %v2897_v41  ;;  %v1780_v10 = vld [vmem:[%s3389_s1 + $0x3b8] sm:$0xf0]  ;;  %v2922_v54 = vor.u32 %v1945_v53, %v1778_v24  ;;  %v2924_v13 = vor.u32 %v1877_v11, %v1524_v47  ;;  %v1490_v42 = vld [vmem:[%s3389_s1 + $0x158] sm:$0xf] }
  0x61   :  { %3518 = vst [vmem:[#allocation54_spill] sm:$0xff] %v2883_v36  ;;  %910 = vmatpush.bf16.msra.mxu0 %v2855_v37  ;;  %938 = vmatpush.bf16.msra.mxu2 %v2870_v31  ;;  %v1746_v26 = vld [vmem:[%s3389_s1 + $0x358] sm:$0xf]  ;;  %v2936_v48 = vor.u32 %v1941_v4, %v1780_v10  ;;  %v1869_v53 = vld [vmem:[%s3389_s1 + $0x15c] sm:$0xf] }
  0x62   :  { %3521 = vst [vmem:[#allocation57_spill] sm:$0xff] %v2918_v49  ;;  %v1937_v24 = vld [vmem:[%s3389_s1 + $0x374] sm:$0xf0]  ;;  %v1492_v11 = vld [vmem:[%s3389_s1 + $0x178] sm:$0xf0] }
  0x63   :  { %924 = vmatpush.bf16.msra.mxu1 %v2868_v22  ;;  %952 = vmatpush.bf16.msra.mxu3 %v2879_v0  ;;  %3522 = vst [vmem:[#allocation58_spill] sm:$0xff] %v2922_v54  ;;  %v1873_v0 = vld [vmem:[%s3389_s1 + $0x174] sm:$0xf0]  ;;  %v1933_v47 = vld [vmem:[%s3389_s1 + $0x35c] sm:$0xf] }
  0x64   :  { %3523 = vst [vmem:[#allocation59_spill] sm:$0xff] %v2924_v13  ;;  %939 = vmatmul.bf16.vlgmr.msra.gmra.mxu2 %v2377_v63  ;;  %v1748_v4 = vld [vmem:[%s3389_s1 + $0x378] sm:$0xf0]  ;;  %911 = vmatmul.bf16.vlgmr.msra.gmra.mxu0 %v2377_v63  ;;  %v2957_v10 = vor.u32 %v1873_v0, %v1490_v42  ;;  %v1714_v0 = vld [vmem:[%s3389_s1 + $0x318] sm:$0xf] }
  0x65   :  { %959 = vmatpush.bf16.msrb.mxu0 %v2881_v1  ;;  %987 = vmatpush.bf16.msrb.mxu2 %v2885_v32  ;;  %3524 = vst [vmem:[#allocation60_spill] sm:$0xff] %v2936_v48  ;;  %v2964_v32 = vor.u32 %v1869_v53, %v1492_v11  ;;  %v2976_v42 = vor.u32 %v1933_v47, %v1748_v4  ;;  %v1460_v53 = vld [vmem:[%s3389_s1 + $0x138] sm:$0xf0]  ;;  %v1857_v1 = vld [vmem:[%s3389_s1 + $0xf4] sm:$0xf0] }
  0x66   :  { %953 = vmatmul.bf16.vlgmr.msra.gmra.mxu3 %v2397_v15  ;;  %3525 = vst [vmem:[#allocation61_spill] sm:$0xff] %v2957_v10  ;;  %925 = vmatmul.bf16.vlgmr.msra.gmra.mxu1 %v2397_v15  ;;  %v1925_v11 = vld [vmem:[%s3389_s1 + $0x31c] sm:$0xf] }
  0x67   :  { %973 = vmatpush.bf16.msrb.mxu1 %v2883_v36  ;;  %1001 = vmatpush.bf16.msrb.mxu3 %v2897_v41  ;;  %v2962_v41 = vor.u32 %v1937_v24, %v1746_v26  ;;  %3527 = vst [vmem:[#allocation63_spill] sm:$0xff] %v2964_v32  ;;  %v1458_v36 = vld [vmem:[%s3389_s1 + $0x118] sm:$0xf]  ;;  %v1861_v24 = vld [vmem:[%s3389_s1 + $0x11c] sm:$0xf] }
  0x68   :  { %3528 = vst [vmem:[#allocation64_spill] sm:$0xff] %v2976_v42  ;;  %v1929_v26 = vld [vmem:[%s3389_s1 + $0x334] sm:$0xf0]  ;;  %v1716_v47 = vld [vmem:[%s3389_s1 + $0x338] sm:$0xf0] }
  0x69   :  { %960 = vmatpush.bf16.msrb.mxu0 %v2918_v49  ;;  %988 = vmatpush.bf16.msrb.mxu2 %v2924_v13  ;;  %3526 = vst [vmem:[#allocation62_spill] sm:$0xff] %v2962_v41  ;;  %v1865_v49 = vld [vmem:[%s3389_s1 + $0x134] sm:$0xf0]  ;;  %v3000_v13 = vor.u32 %v1861_v24, %v1460_v53  ;;  %v1428_v24 = vld [vmem:[%s3389_s1 + $0xf8] sm:$0xf0] }
  0x6a   :  { %v2994_v4 = vor.u32 %v1865_v49, %v1458_v36  ;;  %v1682_v36 = vld [vmem:[%s3389_s1 + $0x2d8] sm:$0xf]  ;;  %v3012_v49 = vor.u32 %v1925_v11, %v1716_v47  ;;  %v1917_v53 = vld [vmem:[%s3389_s1 + $0x2dc] sm:$0xf] }
  0x6b   :  { %974 = vmatpush.bf16.msrb.mxu1 %v2922_v54  ;;  %1002 = vmatpush.bf16.msrb.mxu3 %v2936_v48  ;;  %v2998_v48 = vor.u32 %v1929_v26, %v1714_v0  ;;  %3531 = vst [vmem:[#allocation67_spill] sm:$0xff] %v3000_v13  ;;  %v1426_v54 = vld [vmem:[%s3389_s1 + $0xd8] sm:$0xf]  ;;  %v1853_v26 = vld [vmem:[%s3389_s1 + $0xdc] sm:$0xf] }
  0x6c   :  { %3529 = vst [vmem:[#allocation65_spill] sm:$0xff] %v2994_v4  ;;  %v1921_v0 = vld [vmem:[%s3389_s1 + $0x2f4] sm:$0xf0]  ;;  %v1684_v11 = vld [vmem:[%s3389_s1 + $0x2f8] sm:$0xf0]  ;;  %v3030_v47 = vor.u32 %v1857_v1, %v1426_v54 }
  0x6d   :  { %961 = vmatpush.bf16.msrb.mxu0 %v2957_v10  ;;  %989 = vmatpush.bf16.msrb.mxu2 %v2964_v32  ;;  %3530 = vst [vmem:[#allocation66_spill] sm:$0xff] %v2998_v48  ;;  %v3036_v32 = vor.u32 %v1853_v26, %v1428_v24  ;;  %v1849_v10 = vld [vmem:[%s3389_s1 + $0xb4] sm:$0xf0]  ;;  %v3048_v54 = vor.u32 %v1917_v53, %v1684_v11  ;;  %v1396_v26 = vld [vmem:[%s3389_s1 + $0xb8] sm:$0xf0] }
  0x6e   :  { %3532 = vst [vmem:[#allocation68_spill] sm:$0xff] %v3012_v49  ;;  %v1650_v1 = vld [vmem:[%s3389_s1 + $0x298] sm:$0xf]  ;;  %v1909_v24 = vld [vmem:[%s3389_s1 + $0x29c] sm:$0xf] }
  0x6f   :  { %975 = vmatpush.bf16.msrb.mxu1 %v2962_v41  ;;  %1003 = vmatpush.bf16.msrb.mxu3 %v2976_v42  ;;  %3533 = vst [vmem:[#allocation69_spill] sm:$0xff] %v3030_v47  ;;  %v3034_v42 = vor.u32 %v1921_v0, %v1682_v36  ;;  %v1394_v41 = vld [vmem:[%s3389_s1 + $0x98] sm:$0xf]  ;;  %v1845_v0 = vld [vmem:[%s3389_s1 + $0x9c] sm:$0xf] }
  0x70   :  { %3535 = vst [vmem:[#allocation71_spill] sm:$0xff] %v3036_v32  ;;  %v1913_v36 = vld [vmem:[%s3389_s1 + $0x2b4] sm:$0xf0]  ;;  %v1652_v53 = vld [vmem:[%s3389_s1 + $0x2b8] sm:$0xf0]  ;;  %v3066_v11 = vor.u32 %v1849_v10, %v1394_v41 }
  0x71   :  { %962 = vmatpush.bf16.msrb.mxu0 %v2994_v4  ;;  %990 = vmatpush.bf16.msrb.mxu2 %v3000_v13  ;;  %3534 = vst [vmem:[#allocation70_spill] sm:$0xff] %v3034_v42  ;;  %v3072_v13 = vor.u32 %v1845_v0, %v1396_v26  ;;  %v1841_v4 = vld [vmem:[%s3389_s1 + $0x74] sm:$0xf0]  ;;  %v3084_v10 = vor.u32 %v1909_v24, %v1652_v53  ;;  %v1364_v0 = vld [vmem:[%s3389_s1 + $0x78] sm:$0xf0] }
  0x72   :  { %3536 = vst [vmem:[#allocation72_spill] sm:$0xff] %v3048_v54  ;;  %v1618_v41 = vld [vmem:[%s3389_s1 + $0x258] sm:$0xf]  ;;  %v1901_v26 = vld [vmem:[%s3389_s1 + $0x25c] sm:$0xf] }
  0x73   :  { %976 = vmatpush.bf16.msrb.mxu1 %v2998_v48  ;;  %1004 = vmatpush.bf16.msrb.mxu3 %v3012_v49  ;;  %v3070_v49 = vor.u32 %v1913_v36, %v1650_v1  ;;  %3538 = vst [vmem:[#allocation74_spill] sm:$0xff] %v3072_v13  ;;  %v1362_v48 = vld [vmem:[%s3389_s1 + $0x58] sm:$0xf]  ;;  %v1837_v36 = vld [vmem:[%s3389_s1 + $0x5c] sm:$0xf] }
  0x74   :  { %3539 = vst [vmem:[#allocation75_spill] sm:$0xff] %v3084_v10  ;;  %v1905_v1 = vld [vmem:[%s3389_s1 + $0x274] sm:$0xf0]  ;;  %v1620_v24 = vld [vmem:[%s3389_s1 + $0x278] sm:$0xf0]  ;;  %v3102_v53 = vor.u32 %v1841_v4, %v1362_v48 }
  0x75   :  { %963 = vmatpush.bf16.msrb.mxu0 %v3030_v47  ;;  %991 = vmatpush.bf16.msrb.mxu2 %v3036_v32  ;;  %3537 = vst [vmem:[#allocation73_spill] sm:$0xff] %v3070_v49  ;;  %v3108_v32 = vor.u32 %v1837_v36, %v1364_v0  ;;  %v1833_v47 = vld [vmem:[%s3389_s1 + $0x34] sm:$0xf0]  ;;  %v3120_v4 = vor.u32 %v1901_v26, %v1620_v24  ;;  %v1332_v36 = vld [vmem:[%s3389_s1 + $0x38] sm:$0xf0] }
  0x76   :  { %v1586_v48 = vld [vmem:[%s3389_s1 + $0x218] sm:$0xf]  ;;  %v1893_v0 = vld [vmem:[%s3389_s1 + $0x21c] sm:$0xf] }
  0x77   :  { %977 = vmatpush.bf16.msrb.mxu1 %v3034_v42  ;;  %1005 = vmatpush.bf16.msrb.mxu3 %v3048_v54  ;;  %v3106_v54 = vor.u32 %v1905_v1, %v1618_v41  ;;  %v1330_v42 = vld [vmem:[%s3389_s1 + $0x18] sm:$0xf]  ;;  %v1829_v1 = vld [vmem:[%s3389_s1 + $0x1c] sm:$0xf] }
  0x78   :  { %v1897_v41 = vld [vmem:[%s3389_s1 + $0x234] sm:$0xf0]  ;;  %v1588_v26 = vld [vmem:[%s3389_s1 + $0x238] sm:$0xf0]  ;;  %v3138_v24 = vor.u32 %v1833_v47, %v1330_v42  ;;  %v3564_v42 = vld [vmem:[#allocation26_spill] sm:$0xff] }
  0x79   :  { %964 = vmatpush.bf16.msrb.mxu0 %v3066_v11  ;;  %992 = vmatpush.bf16.msrb.mxu2 %v3072_v13  ;;  %v3144_v13 = vor.u32 %v1829_v1, %v1332_v36  ;;  %v3565_v47 = vld [vmem:[#allocation27_spill] sm:$0xff]  ;;  %v3568_v1 = vld [vmem:[#allocation30_spill] sm:$0xff] }
  0x7a   :  { %v3569_v36 = vld [vmem:[#allocation31_spill] sm:$0xff] }
  0x7b   :  { %978 = vmatpush.bf16.msrb.mxu1 %v3070_v49  ;;  %1006 = vmatpush.bf16.msrb.mxu3 %v3084_v10  ;;  %v3142_v10 = vor.u32 %v1897_v41, %v1586_v48  ;;  %v3147_v49 = vor.u32 %v1893_v0, %v1588_v26  ;;  %v3566_v48 = vld [vmem:[#allocation28_spill] sm:$0xff]  ;;  %v3567_v41 = vld [vmem:[#allocation29_spill] sm:$0xff] }
  0x7c   :  { %v3570_v0 = vld [vmem:[#allocation32_spill] sm:$0xff]  ;;  %v3571_v26 = vld [vmem:[#allocation33_spill] sm:$0xff] }
  0x7d   :  { %965 = vmatpush.bf16.msrb.mxu0 %v3102_v53  ;;  %993 = vmatpush.bf16.msrb.mxu2 %v3108_v32 }
  0x7f   :  { %979 = vmatpush.bf16.msrb.mxu1 %v3106_v54  ;;  %1007 = vmatpush.bf16.msrb.mxu3 %v3120_v4 }
  0x81   :  { %966 = vmatpush.bf16.msrb.mxu0 %v3138_v24  ;;  %994 = vmatpush.bf16.msrb.mxu2 %v3144_v13 }
  0x83   :  { %980 = vmatpush.bf16.msrb.mxu1 %v3142_v10  ;;  %1008 = vmatpush.bf16.msrb.mxu3 %v3147_v49 }
  0x84   :  { %967 = vmatmul.bf16.vlgmr.msrb.gmra.mxu0 %v2377_v63  ;;  %995 = vmatmul.bf16.vlgmr.msrb.gmra.mxu2 %v2377_v63  ;;  %v3562_v63 = vld [vmem:[#allocation24_spill] sm:$0xff] }
  0x85   :  { %1028 = vmatpush.bf16.msra.mxu0 %v1982_v3  ;;  %1056 = vmatpush.bf16.msra.mxu2 %v1995_v8  ;;  %v1820_v3 = vld [vmem:[%s3390_s0 + $0x10] sm:$0xf]  ;;  %v1956_v8 = vld [vmem:[%s3390_s0 + $0x14] sm:$0xf] }
  0x86   :  { %981 = vmatmul.bf16.vlgmr.msrb.gmra.mxu1 %v2397_v15  ;;  %1009 = vmatmul.bf16.vlgmr.msrb.gmra.mxu3 %v2397_v15  ;;  %v3563_v15 = vld [vmem:[#allocation25_spill] sm:$0xff] }
  0x87   :  { %1042 = vmatpush.bf16.msra.mxu1 %v1993_v7  ;;  %1070 = vmatpush.bf16.msra.mxu3 %v2007_v12  ;;  %v1957_v7 = vld [vmem:[%s3390_s0 + $0x14] sm:$0xf0]  ;;  %v1822_v12 = vld [vmem:[%s3390_s0 + $0x18] sm:$0xf0] }
  0x89   :  { %1029 = vmatpush.bf16.msra.mxu0 %v2020_v16  ;;  %1057 = vmatpush.bf16.msra.mxu2 %v2034_v21  ;;  %v3198_v16 = vor.u32 %v1957_v7, %v1820_v3  ;;  %v3540_v21 = vld [vmem:[#allocation2_spill] sm:$0xff] }
  0x8a   :  { %v3572_v3 = vld [vmem:[#allocation34_spill] sm:$0xff] }
  0x8b   :  { %1043 = vmatpush.bf16.msra.mxu1 %v2022_v17  ;;  %1071 = vmatpush.bf16.msra.mxu3 %v2045_v25  ;;  %v3202_v17 = vor.u32 %v1956_v8, %v1822_v12  ;;  %v3541_v25 = vld [vmem:[#allocation3_spill] sm:$0xff]  ;;  %v3574_v12 = vld [vmem:[#allocation36_spill] sm:$0xff] }
  0x8c   :  { %v3573_v8 = vld [vmem:[#allocation35_spill] sm:$0xff] }
  0x8d   :  { %1030 = vmatpush.bf16.msra.mxu0 %v2057_v29  ;;  %1058 = vmatpush.bf16.msra.mxu2 %v2072_v34  ;;  %v3542_v29 = vld [vmem:[#allocation4_spill] sm:$0xff]  ;;  %v3544_v34 = vld [vmem:[#allocation6_spill] sm:$0xff] }
  0x8f   :  { %1044 = vmatpush.bf16.msra.mxu1 %v2070_v33  ;;  %1072 = vmatpush.bf16.msra.mxu3 %v2084_v38  ;;  %v3543_v33 = vld [vmem:[#allocation5_spill] sm:$0xff] }
  0x91   :  { %1031 = vmatpush.bf16.msra.mxu0 %v2102_v44  ;;  %1059 = vmatpush.bf16.msra.mxu2 %v2108_v46  ;;  %v3545_v44 = vld [vmem:[#allocation7_spill] sm:$0xff]  ;;  %v3547_v46 = vld [vmem:[#allocation9_spill] sm:$0xff] }
  0x93   :  { %1045 = vmatpush.bf16.msra.mxu1 %v2106_v45  ;;  %1073 = vmatpush.bf16.msra.mxu3 %v2120_v50  ;;  %v3546_v45 = vld [vmem:[#allocation8_spill] sm:$0xff] }
  0x95   :  { %1032 = vmatpush.bf16.msra.mxu0 %v2138_v56  ;;  %1060 = vmatpush.bf16.msra.mxu2 %v2144_v58  ;;  %v3548_v56 = vld [vmem:[#allocation10_spill] sm:$0xff]  ;;  %v3549_v58 = vld [vmem:[#allocation11_spill] sm:$0xff] }
  0x97   :  { %1046 = vmatpush.bf16.msra.mxu1 %v2142_v57  ;;  %1074 = vmatpush.bf16.msra.mxu3 %v2156_v62  ;;  %v3550_v62 = vld [vmem:[#allocation12_spill] sm:$0xff] }
  0x99   :  { %1033 = vmatpush.bf16.msra.mxu0 %v2174_v5  ;;  %1061 = vmatpush.bf16.msra.mxu2 %v2180_v9  ;;  %v3551_v5 = vld [vmem:[#allocation13_spill] sm:$0xff] }
  0x9b   :  { %1047 = vmatpush.bf16.msra.mxu1 %v2178_v6  ;;  %1075 = vmatpush.bf16.msra.mxu3 %v2192_v14  ;;  %v3552_v14 = vld [vmem:[#allocation14_spill] sm:$0xff] }
  0x9d   :  { %1034 = vmatpush.bf16.msra.mxu0 %v2210_v23  ;;  %1062 = vmatpush.bf16.msra.mxu2 %v2222_v28  ;;  %v3554_v28 = vld [vmem:[#allocation16_spill] sm:$0xff] }
  0x9f   :  { %1048 = vmatpush.bf16.msra.mxu1 %v2220_v27  ;;  %1076 = vmatpush.bf16.msra.mxu3 %v2234_v35  ;;  %v3553_v27 = vld [vmem:[#allocation15_spill] sm:$0xff] }
  0xa1   :  { %1035 = vmatpush.bf16.msra.mxu0 %v2255_v43  ;;  %1063 = vmatpush.bf16.msra.mxu2 %v2270_v52  ;;  %v3555_v43 = vld [vmem:[#allocation17_spill] sm:$0xff]  ;;  %v3556_v52 = vld [vmem:[#allocation18_spill] sm:$0xff] }
  0xa3   :  { %1049 = vmatpush.bf16.msra.mxu1 %v2268_v51  ;;  %1077 = vmatpush.bf16.msra.mxu3 %v2279_v55 }
  0xa4   :  { %1036 = vmatmul.bf16.vlgmr.msra.gmra.mxu0 %v3198_v16  ;;  %1064 = vmatmul.bf16.vlgmr.msra.gmra.mxu2 %v3198_v16 }
  0xa5   :  { %1084 = vmatpush.bf16.msrb.mxu0 %v2281_v59  ;;  %1112 = vmatpush.bf16.msrb.mxu2 %v2285_v61  ;;  %v814_v50 = vpop.f32.mrf.mxu1  ;;  %v3557_v59 = vld [vmem:[#allocation19_spill] sm:$0xff]  ;;  %v3559_v61 = vld [vmem:[#allocation21_spill] sm:$0xff] }
  0xa6   :  { %1050 = vmatmul.bf16.vlgmr.msra.gmra.mxu1 %v3202_v17  ;;  %1078 = vmatmul.bf16.vlgmr.msra.gmra.mxu3 %v3202_v17 }
  0xa7   :  { %1098 = vmatpush.bf16.msrb.mxu1 %v2283_v60  ;;  %1126 = vmatpush.bf16.msrb.mxu3 %v2297_v2  ;;  %v800_v38 = vpop.f32.mrf.mxu0  ;;  %v3558_v60 = vld [vmem:[#allocation20_spill] sm:$0xff] }
  0xa8   :  { %v3226_v57 = vadd.f32 %v814_v50, %v800_v38  ;;  %v3578_v38 = vld [vmem:[#allocation40_spill] sm:$0xff] }
  0xa9   :  { %1085 = vmatpush.bf16.msrb.mxu0 %v2318_v18  ;;  %1113 = vmatpush.bf16.msrb.mxu2 %v2324_v20 }
  0xab   :  { %1099 = vmatpush.bf16.msrb.mxu1 %v2322_v19  ;;  %1127 = vmatpush.bf16.msrb.mxu3 %v2336_v30  ;;  %v842_v9 = vpop.f32.mrf.mxu3  ;;  %v3560_v19 = vld [vmem:[#allocation22_spill] sm:$0xff]  ;;  %v3561_v30 = vld [vmem:[#allocation23_spill] sm:$0xff] }
  0xad   :  { %1086 = vmatpush.bf16.msrb.mxu0 %v3540_v21  ;;  %1114 = vmatpush.bf16.msrb.mxu2 %v3542_v29  ;;  %v828_v6 = vpop.f32.mrf.mxu2  ;;  %v816_v51 = vpop.f32.mrf.mxu1 }
  0xae   :  { %v3232_v23 = vadd.f32 %v842_v9, %v828_v6  ;;  %v3583_v9 = vld [vmem:[#allocation45_spill] sm:$0xff] }
  0xaf   :  { %1100 = vmatpush.bf16.msrb.mxu1 %v3541_v25  ;;  %1128 = vmatpush.bf16.msrb.mxu3 %v3543_v33  ;;  %v802_v35 = vpop.f32.mrf.mxu0  ;;  %v3575_v25 = vld [vmem:[#allocation37_spill] sm:$0xff]  ;;  %v3576_v33 = vld [vmem:[#allocation38_spill] sm:$0xff] }
  0xb0   :  { %v3238_v55 = vadd.f32 %v816_v51, %v802_v35  ;;  %v3586_v35 = vld [vmem:[#allocation48_spill] sm:$0xff]  ;;  %v3587_v51 = vld [vmem:[#allocation49_spill] sm:$0xff] }
  0xb1   :  { %1087 = vmatpush.bf16.msrb.mxu0 %v3544_v34  ;;  %1115 = vmatpush.bf16.msrb.mxu2 %v3546_v45  ;;  %v3577_v34 = vld [vmem:[#allocation39_spill] sm:$0xff]  ;;  %v3579_v45 = vld [vmem:[#allocation41_spill] sm:$0xff] }
  0xb3   :  { %1101 = vmatpush.bf16.msrb.mxu1 %v3545_v44  ;;  %1129 = vmatpush.bf16.msrb.mxu3 %v3547_v46  ;;  %v844_v18 = vpop.f32.mrf.mxu3 }
  0xb5   :  { %1088 = vmatpush.bf16.msrb.mxu0 %v3548_v56  ;;  %1116 = vmatpush.bf16.msrb.mxu2 %v3550_v62  ;;  %v830_v2 = vpop.f32.mrf.mxu2  ;;  %v3580_v56 = vld [vmem:[#allocation42_spill] sm:$0xff]  ;;  %v3581_v62 = vld [vmem:[#allocation43_spill] sm:$0xff] }
  0xb6   :  { %v3244_v20 = vadd.f32 %v844_v18, %v830_v2  ;;  %v3590_v2 = vld [vmem:[#allocation52_spill] sm:$0xff]  ;;  %v3591_v18 = vld [vmem:[#allocation53_spill] sm:$0xff] }
  0xb7   :  { %1102 = vmatpush.bf16.msrb.mxu1 %v3549_v58  ;;  %1130 = vmatpush.bf16.msrb.mxu3 %v3551_v5  ;;  %v3582_v5 = vld [vmem:[#allocation44_spill] sm:$0xff] }
  0xb9   :  { %1089 = vmatpush.bf16.msrb.mxu0 %v3552_v14  ;;  %1117 = vmatpush.bf16.msrb.mxu2 %v3554_v28  ;;  %v3585_v28 = vld [vmem:[#allocation47_spill] sm:$0xff] }
  0xbb   :  { %1103 = vmatpush.bf16.msrb.mxu1 %v3553_v27  ;;  %1131 = vmatpush.bf16.msrb.mxu3 %v3555_v43  ;;  %v3584_v27 = vld [vmem:[#allocation46_spill] sm:$0xff] }
  0xbd   :  { %1090 = vmatpush.bf16.msrb.mxu0 %v3556_v52  ;;  %1118 = vmatpush.bf16.msrb.mxu2 %v3558_v60  ;;  %v3588_v60 = vld [vmem:[#allocation50_spill] sm:$0xff] }
  0xbf   :  { %1104 = vmatpush.bf16.msrb.mxu1 %v3557_v59  ;;  %1132 = vmatpush.bf16.msrb.mxu3 %v3559_v61  ;;  %v3589_v61 = vld [vmem:[#allocation51_spill] sm:$0xff] }
  0xc1   :  { %1091 = vmatpush.bf16.msrb.mxu0 %v3560_v19  ;;  %1119 = vmatpush.bf16.msrb.mxu2 %v3562_v63  ;;  %v856_v7 = vpop.f32.mrf.mxu0  ;;  %v3592_v19 = vld [vmem:[#allocation54_spill] sm:$0xff]  ;;  %v3594_v63 = vld [vmem:[#allocation56_spill] sm:$0xff] }
  0xc3   :  { %1105 = vmatpush.bf16.msrb.mxu1 %v3561_v30  ;;  %1133 = vmatpush.bf16.msrb.mxu3 %v3563_v15  ;;  %v870_v21 = vpop.f32.mrf.mxu1  ;;  %v3593_v30 = vld [vmem:[#allocation55_spill] sm:$0xff] }
  0xc4   :  { %1092 = vmatmul.bf16.vlgmr.msrb.gmra.mxu0 %v3198_v16  ;;  %1120 = vmatmul.bf16.vlgmr.msrb.gmra.mxu2 %v3198_v16  ;;  %v3265_v29 = vadd.f32 %v870_v21, %v856_v7  ;;  %v3606_v7 = vld [vmem:[#allocation68_spill] sm:$0xff]  ;;  %v3607_v21 = vld [vmem:[#allocation69_spill] sm:$0xff] }
  0xc5   :  { %1140 = vmatpush.bf16.msra.mxu0 %v3564_v42  ;;  %1168 = vmatpush.bf16.msra.mxu2 %v3566_v48  ;;  %v3600_v42 = vld [vmem:[#allocation62_spill] sm:$0xff] }
  0xc6   :  { %1106 = vmatmul.bf16.vlgmr.msrb.gmra.mxu1 %v3202_v17  ;;  %1134 = vmatmul.bf16.vlgmr.msrb.gmra.mxu3 %v3202_v17 }
  0xc7   :  { %1154 = vmatpush.bf16.msra.mxu1 %v3565_v47  ;;  %1182 = vmatpush.bf16.msra.mxu3 %v3567_v41  ;;  %v884_v44 = vpop.f32.mrf.mxu2  ;;  %v3601_v47 = vld [vmem:[#allocation63_spill] sm:$0xff]  ;;  %v3602_v41 = vld [vmem:[#allocation64_spill] sm:$0xff] }
  0xc9   :  { %1141 = vmatpush.bf16.msra.mxu0 %v3568_v1  ;;  %1169 = vmatpush.bf16.msra.mxu2 %v3570_v0  ;;  %v898_v46 = vpop.f32.mrf.mxu3  ;;  %v858_v58 = vpop.f32.mrf.mxu0  ;;  %v3604_v0 = vld [vmem:[#allocation66_spill] sm:$0xff] }
  0xca   :  { %v3271_v50 = vadd.f32 %v898_v46, %v884_v44  ;;  %v3610_v44 = vld [vmem:[#allocation72_spill] sm:$0xff]  ;;  %v3611_v46 = vld [vmem:[#allocation73_spill] sm:$0xff] }
  0xcb   :  { %1155 = vmatpush.bf16.msra.mxu1 %v3569_v36  ;;  %1183 = vmatpush.bf16.msra.mxu3 %v3571_v26  ;;  %v872_v6 = vpop.f32.mrf.mxu1  ;;  %v3603_v36 = vld [vmem:[#allocation65_spill] sm:$0xff]  ;;  %v3605_v26 = vld [vmem:[#allocation67_spill] sm:$0xff] }
  0xcc   :  { %v3277_v14 = vadd.f32 %v872_v6, %v858_v58 }
  0xcd   :  { %1142 = vmatpush.bf16.msra.mxu0 %v3572_v3  ;;  %1170 = vmatpush.bf16.msra.mxu2 %v3574_v12 }
  0xcf   :  { %1156 = vmatpush.bf16.msra.mxu1 %v3573_v8  ;;  %1184 = vmatpush.bf16.msra.mxu3 %v3575_v25  ;;  %v886_v43 = vpop.f32.mrf.mxu2 }
  0xd1   :  { %1143 = vmatpush.bf16.msra.mxu0 %v3576_v33  ;;  %1171 = vmatpush.bf16.msra.mxu2 %v3578_v38  ;;  %v900_v52 = vpop.f32.mrf.mxu3  ;;  %v3608_v33 = vld [vmem:[#allocation70_spill] sm:$0xff] }
  0xd2   :  { %v3283_v59 = vadd.f32 %v900_v52, %v886_v43 }
  0xd3   :  { %1157 = vmatpush.bf16.msra.mxu1 %v3577_v34  ;;  %1185 = vmatpush.bf16.msra.mxu3 %v3579_v45  ;;  %v3609_v34 = vld [vmem:[#allocation71_spill] sm:$0xff] }
  0xd5   :  { %1144 = vmatpush.bf16.msra.mxu0 %v3580_v56  ;;  %1172 = vmatpush.bf16.msra.mxu2 %v3582_v5  ;;  %v3612_v56 = vld [vmem:[#allocation74_spill] sm:$0xff] }
  0xd7   :  { %1158 = vmatpush.bf16.msra.mxu1 %v3581_v62  ;;  %1186 = vmatpush.bf16.msra.mxu3 %v3583_v9  ;;  %v3613_v62 = vld [vmem:[#allocation75_spill] sm:$0xff] }
  0xd9   :  { %1145 = vmatpush.bf16.msra.mxu0 %v3584_v27  ;;  %1173 = vmatpush.bf16.msra.mxu2 %v3586_v35 }
  0xdb   :  { %1159 = vmatpush.bf16.msra.mxu1 %v3585_v28  ;;  %1187 = vmatpush.bf16.msra.mxu3 %v3587_v51 }
  0xdd   :  { %1146 = vmatpush.bf16.msra.mxu0 %v3588_v60  ;;  %1174 = vmatpush.bf16.msra.mxu2 %v2822_v40  ;;  %v3597_v40 = vld [vmem:[#allocation59_spill] sm:$0xff] }
  0xdf   :  { %1160 = vmatpush.bf16.msra.mxu1 %v3589_v61  ;;  %1188 = vmatpush.bf16.msra.mxu3 %v2834_v39  ;;  %v3596_v39 = vld [vmem:[#allocation58_spill] sm:$0xff] }
  0xe1   :  { %1147 = vmatpush.bf16.msra.mxu0 %v2855_v37  ;;  %1175 = vmatpush.bf16.msra.mxu2 %v2870_v31  ;;  %v3598_v37 = vld [vmem:[#allocation60_spill] sm:$0xff]  ;;  %v3599_v31 = vld [vmem:[#allocation61_spill] sm:$0xff]  ;;  %v912_v15 = vpop.f32.mrf.mxu0 }
  0xe3   :  { %1161 = vmatpush.bf16.msra.mxu1 %v2868_v22  ;;  %1189 = vmatpush.bf16.msra.mxu3 %v3590_v2  ;;  %v3595_v22 = vld [vmem:[#allocation57_spill] sm:$0xff]  ;;  %v926_v48 = vpop.f32.mrf.mxu1 }
  0xe4   :  { %1148 = vmatmul.bf16.vlgmr.msra.gmra.mxu0 %v3198_v16  ;;  %1176 = vmatmul.bf16.vlgmr.msra.gmra.mxu2 %v3198_v16  ;;  %v3309_v1 = vadd.f32 %v926_v48, %v912_v15 }
  0xe5   :  { %1196 = vmatpush.bf16.msrb.mxu0 %v3591_v18  ;;  %1224 = vmatpush.bf16.msrb.mxu2 %v3593_v30 }
  0xe6   :  { %1162 = vmatmul.bf16.vlgmr.msra.gmra.mxu1 %v3202_v17  ;;  %1190 = vmatmul.bf16.vlgmr.msra.gmra.mxu3 %v3202_v17 }
  0xe7   :  { %1210 = vmatpush.bf16.msrb.mxu1 %v3592_v19  ;;  %1238 = vmatpush.bf16.msrb.mxu3 %v3594_v63  ;;  %v940_v3 = vpop.f32.mrf.mxu2 }
  0xe9   :  { %1197 = vmatpush.bf16.msrb.mxu0 %v3595_v22  ;;  %1225 = vmatpush.bf16.msrb.mxu2 %v3597_v40  ;;  %v954_v8 = vpop.f32.mrf.mxu3  ;;  %v914_v25 = vpop.f32.mrf.mxu0 }
  0xea   :  { %v3315_v12 = vadd.f32 %v954_v8, %v940_v3 }
  0xeb   :  { %1211 = vmatpush.bf16.msrb.mxu1 %v3596_v39  ;;  %1239 = vmatpush.bf16.msrb.mxu3 %v3598_v37  ;;  %v928_v38 = vpop.f32.mrf.mxu1 }
  0xec   :  { %v3321_v45 = vadd.f32 %v928_v38, %v914_v25 }
  0xed   :  { %1198 = vmatpush.bf16.msrb.mxu0 %v3599_v31  ;;  %1226 = vmatpush.bf16.msrb.mxu2 %v3601_v47 }
  0xef   :  { %1212 = vmatpush.bf16.msrb.mxu1 %v3600_v42  ;;  %1240 = vmatpush.bf16.msrb.mxu3 %v3602_v41  ;;  %v942_v58 = vpop.f32.mrf.mxu2 }
  0xf1   :  { %1199 = vmatpush.bf16.msrb.mxu0 %v3603_v36  ;;  %1227 = vmatpush.bf16.msrb.mxu2 %v3605_v26  ;;  %v956_v5 = vpop.f32.mrf.mxu3 }
  0xf2   :  { %v3327_v6 = vadd.f32 %v956_v5, %v942_v58 }
  0xf3   :  { %1213 = vmatpush.bf16.msrb.mxu1 %v3604_v0  ;;  %1241 = vmatpush.bf16.msrb.mxu3 %v3606_v7 }
  0xf5   :  { %1200 = vmatpush.bf16.msrb.mxu0 %v3607_v21  ;;  %1228 = vmatpush.bf16.msrb.mxu2 %v3609_v34 }
  0xf7   :  { %1214 = vmatpush.bf16.msrb.mxu1 %v3608_v33  ;;  %1242 = vmatpush.bf16.msrb.mxu3 %v3610_v44 }
  0xf9   :  { %1201 = vmatpush.bf16.msrb.mxu0 %v3066_v11  ;;  %1229 = vmatpush.bf16.msrb.mxu2 %v3612_v56 }
  0xfb   :  { %1215 = vmatpush.bf16.msrb.mxu1 %v3611_v46  ;;  %1243 = vmatpush.bf16.msrb.mxu3 %v3613_v62 }
  0xfd   :  { %1202 = vmatpush.bf16.msrb.mxu0 %v3102_v53  ;;  %1230 = vmatpush.bf16.msrb.mxu2 %v3108_v32 }
  0xff   :  { %1216 = vmatpush.bf16.msrb.mxu1 %v3106_v54  ;;  %1244 = vmatpush.bf16.msrb.mxu3 %v3120_v4 }
 0x101   :  { %1203 = vmatpush.bf16.msrb.mxu0 %v3138_v24  ;;  %1231 = vmatpush.bf16.msrb.mxu2 %v3144_v13  ;;  %v968_v54 = vpop.f32.mrf.mxu0 }
 0x103   :  { %1217 = vmatpush.bf16.msrb.mxu1 %v3142_v10  ;;  %1245 = vmatpush.bf16.msrb.mxu3 %v3147_v49  ;;  %v982_v32 = vpop.f32.mrf.mxu1 }
 0x104   :  { %1204 = vmatmul.bf16.vlgmr.msrb.gmra.mxu0 %v3198_v16  ;;  %1232 = vmatmul.bf16.vlgmr.msrb.gmra.mxu2 %v3198_v16  ;;  %v3341_v11 = vadd.f32 %v982_v32, %v968_v54 }
 0x106   :  { %1218 = vmatmul.bf16.vlgmr.msrb.gmra.mxu1 %v3202_v17  ;;  %1246 = vmatmul.bf16.vlgmr.msrb.gmra.mxu3 %v3202_v17 }
 0x107   :  { %v996_v53 = vpop.f32.mrf.mxu2 }
 0x109   :  { %v1010_v4 = vpop.f32.mrf.mxu3  ;;  %v970_v10 = vpop.f32.mrf.mxu0 }
 0x10a   :  { %v3343_v24 = vadd.f32 %v1010_v4, %v996_v53 }
 0x10b   :  { %v984_v13 = vpop.f32.mrf.mxu1 }
 0x10c   :  { %v3345_v9 = vadd.f32 %v984_v13, %v970_v10 }
 0x10f   :  { %v998_v49 = vpop.f32.mrf.mxu2 }
 0x111   :  { %v1012_v27 = vpop.f32.mrf.mxu3 }
 0x112   :  { %v3347_v28 = vadd.f32 %v1012_v27, %v998_v49 }
 0x121   :  { %v1037_v35 = vpop.f32.mrf.mxu0 }
 0x123   :  { %v1051_v16 = vpop.f32.mrf.mxu1 }
 0x124   :  { %v1052_v40 = vadd.f32 %v1051_v16, %v1037_v35 }
 0x126   :  { %v1252_v47 = vmax.f32 %v3226_v57, %v1052_v40 }
 0x127   :  { %v1065_v43 = vpop.f32.mrf.mxu2 }
 0x129   :  { %v1079_v17 = vpop.f32.mrf.mxu3  ;;  %v1039_v51 = vpop.f32.mrf.mxu0 }
 0x12a   :  { %v1080_v36 = vadd.f32 %v1079_v17, %v1065_v43 }
 0x12b   :  { %v1053_v52 = vpop.f32.mrf.mxu1 }
 0x12c   :  { %v1054_v26 = vadd.f32 %v1053_v52, %v1039_v51  ;;  %v1253_v34 = vmax.f32 %v3232_v23, %v1080_v36 }
 0x12f   :  { %v1067_v60 = vpop.f32.mrf.mxu2 }
 0x131   :  { %v1081_v61 = vpop.f32.mrf.mxu3 }
 0x132   :  { %v1082_v56 = vadd.f32 %v1081_v61, %v1067_v60 }
 0x134   :  { %v1261_v23 = vmax.f32 %v3244_v20, %v1082_v56 }
 0x141   :  { %v1093_v2 = vpop.f32.mrf.mxu0 }
 0x143   :  { %v1107_v18 = vpop.f32.mrf.mxu1 }
 0x144   :  { %v1108_v53 = vadd.f32 %v1107_v18, %v1093_v2 }
 0x146   :  { %v1254_v49 = vmax.f32 %v3265_v29, %v1108_v53 }
 0x147   :  { %v1121_v19 = vpop.f32.mrf.mxu2 }
 0x149   :  { %v1135_v30 = vpop.f32.mrf.mxu3  ;;  %v1095_v63 = vpop.f32.mrf.mxu0 }
 0x14a   :  { %v1136_v16 = vadd.f32 %v1135_v30, %v1121_v19 }
 0x14b   :  { %v1109_v22 = vpop.f32.mrf.mxu1 }
 0x14c   :  { %v1110_v20 = vadd.f32 %v1109_v22, %v1095_v63  ;;  %v1255_v2 = vmax.f32 %v3271_v50, %v1136_v16 }
 0x14f   :  { %v1123_v39 = vpop.f32.mrf.mxu2 }
 0x151   :  { %v1137_v37 = vpop.f32.mrf.mxu3 }
 0x152   :  { %v1138_v63 = vadd.f32 %v1137_v37, %v1123_v39 }
 0x154   :  { %v1263_v50 = vmax.f32 %v3283_v59, %v1138_v63 }
 0x161   :  { %v1149_v31 = vpop.f32.mrf.mxu0 }
 0x163   :  { %v1163_v15 = vpop.f32.mrf.mxu1 }
 0x164   :  { %v1164_v42 = vadd.f32 %v1163_v15, %v1149_v31 }
 0x166   :  { %v1256_v48 = vmax.f32 %v3309_v1, %v1164_v42  ;;  %v1260_v1 = vmax.f32 %v3238_v55, %v1054_v26 }
 0x167   :  { %v1177_v0 = vpop.f32.mrf.mxu2 }
 0x168   :  { %v1268_v41 = vmax.f32 %v1252_v47, %v1256_v48 }
 0x169   :  { %v1191_v7 = vpop.f32.mrf.mxu3  ;;  %v1151_v8 = vpop.f32.mrf.mxu0 }
 0x16a   :  { %v1276_v3 = vmax.f32 %v1268_v41, 0.0  ;;  %v1192_v21 = vadd.f32 %v1191_v7, %v1177_v0 }
 0x16b   :  { %v1165_v25 = vpop.f32.mrf.mxu1 }
 0x16c   :  { %1284 = vst [vmem:[%s3391_s2] sm:$0xff] %v1276_v3  ;;  %v1166_v33 = vadd.f32 %v1165_v25, %v1151_v8  ;;  %v1257_v57 = vmax.f32 %v3315_v12, %v1192_v21 }
 0x16e   :  { %v1264_v38 = vmax.f32 %v3321_v45, %v1166_v33  ;;  %v1269_v44 = vmax.f32 %v1253_v34, %v1257_v57 }
 0x16f   :  { %v1179_v62 = vpop.f32.mrf.mxu2 }
 0x170   :  { %v1272_v46 = vmax.f32 %v1260_v1, %v1264_v38  ;;  %v1277_v58 = vmax.f32 %v1269_v44, 0.0 }
 0x171   :  { %v1193_v54 = vpop.f32.mrf.mxu3 }
 0x172   :  { %v1280_v5 = vmax.f32 %v1272_v46, 0.0  ;;  %1285 = vst [vmem:[%s3391_s2 + $0x8] sm:$0xff] %v1277_v58  ;;  %v1194_v32 = vadd.f32 %v1193_v54, %v1179_v62 }
 0x174   :  { %1288 = vst [vmem:[%s3391_s2 + $0x20] sm:$0xff] %v1280_v5  ;;  %v1265_v55 = vmax.f32 %v3327_v6, %v1194_v32 }
 0x176   :  { %v1273_v12 = vmax.f32 %v1261_v23, %v1265_v55 }
 0x178   :  { %v1281_v45 = vmax.f32 %v1273_v12, 0.0 }
 0x17a   :  { %1289 = vst [vmem:[%s3391_s2 + $0x28] sm:$0xff] %v1281_v45 }
 0x181   :  { %v1205_v4 = vpop.f32.mrf.mxu0 }
 0x183   :  { %v1219_v10 = vpop.f32.mrf.mxu1 }
 0x184   :  { %v1220_v13 = vadd.f32 %v1219_v10, %v1205_v4 }
 0x186   :  { %v1258_v27 = vmax.f32 %v3341_v11, %v1220_v13  ;;  %v1262_v11 = vmax.f32 %v3277_v14, %v1110_v20 }
 0x187   :  { %v1233_v43 = vpop.f32.mrf.mxu2 }
 0x188   :  { %v1270_v35 = vmax.f32 %v1254_v49, %v1258_v27 }
 0x189   :  { %v1247_v6 = vpop.f32.mrf.mxu3  ;;  %v1207_v51 = vpop.f32.mrf.mxu0 }
 0x18a   :  { %v1278_v17 = vmax.f32 %v1270_v35, 0.0  ;;  %v1248_v52 = vadd.f32 %v1247_v6, %v1233_v43 }
 0x18b   :  { %v1221_v60 = vpop.f32.mrf.mxu1 }
 0x18c   :  { %1286 = vst [vmem:[%s3391_s2 + $0x10] sm:$0xff] %v1278_v17  ;;  %v1222_v61 = vadd.f32 %v1221_v60, %v1207_v51  ;;  %v1259_v29 = vmax.f32 %v3343_v24, %v1248_v52 }
 0x18e   :  { %v1266_v18 = vmax.f32 %v3345_v9, %v1222_v61  ;;  %v1271_v19 = vmax.f32 %v1255_v2, %v1259_v29 }
 0x18f   :  { %v1235_v40 = vpop.f32.mrf.mxu2 }
 0x190   :  { %v1274_v30 = vmax.f32 %v1262_v11, %v1266_v18  ;;  %v1279_v22 = vmax.f32 %v1271_v19, 0.0 }
 0x191   :  { %v1249_v15 = vpop.f32.mrf.mxu3 }
 0x192   :  { %v1282_v31 = vmax.f32 %v1274_v30, 0.0  ;;  %1287 = vst [vmem:[%s3391_s2 + $0x18] sm:$0xff] %v1279_v22  ;;  %v1250_v42 = vadd.f32 %v1249_v15, %v1235_v40 }
 0x194   :  { %1290 = vst [vmem:[%s3391_s2 + $0x30] sm:$0xff] %v1282_v31  ;;  %v1267_v14 = vmax.f32 %v3347_v28, %v1250_v42 }
 0x196   :  { %v1275_v24 = vmax.f32 %v1263_v50, %v1267_v14 }
 0x198   :  { %v1283_v9 = vmax.f32 %v1275_v24, 0.0 }
 0x19a   :  { %1291 = vst [vmem:[%s3391_s2 + $0x38] sm:$0xff] %v1283_v9 }

</bundles_post_ra>
